<compile_context>
chip_gen: v6e
topology: v6e:2x2x1
jax: 0.10.0
libtpu: 0.0.40
codegen_flags: <defaults>
</compile_context>

<pallas_src>
import functools

import jax
import jax.numpy as jnp
from jax import lax
from jax.experimental import pallas as pl
from jax.experimental.pallas import tpu as pltpu

NER_LABEL_IDS = {'O': 0, 'B-PER': 1, 'I-PER': 2, 'B-ORG': 3, 'I-ORG': 4,
                 'B-LOC': 5, 'I-LOC': 6, 'B-TIME': 7, 'I-TIME': 8,
                 'B-O': 0, 'I-O': 0}
NUM_LABELS_NER = len(NER_LABEL_IDS)            # 11
SENTIMENT_LABEL_IDS = {'neutral': 0, 'positive': 1, 'negative': 2}
NUM_LABELS_SENT = len(SENTIMENT_LABEL_IDS)     # 3
SENT_PAD = 128                                 # lane-dense padded head width

# small synthetic "xlm-roberta" config
HIDDEN = 32
N_HEADS = 2
HEAD_DIM = HIDDEN // N_HEADS
FFN_DIM = 64
N_LAYERS = 2
VOCAB = 100
MAX_POS = 32
LN_EPS = 1e-5


# --------------------------- in-kernel helpers ---------------------------

def _full(shape):
    """Full-array BlockSpec for a grid=(1,) pallas_call."""
    return pl.BlockSpec(shape, lambda *_: (0,) * len(shape))


def _ln(x, g, b):
    mu = jnp.mean(x, axis=-1, keepdims=True)
    var = jnp.mean((x - mu) ** 2, axis=-1, keepdims=True)
    return (x - mu) * lax.rsqrt(var + LN_EPS) * g + b


_A1, _A2, _A3, _A4, _A5 = (0.254829592, -0.284496736, 1.421413741,
                           -1.453152027, 1.061405429)
_EP = 0.3275911


def _erf(x):
    # HF XLM-R uses exact (erf) GELU.  lax.erf has no guaranteed Mosaic
    # lowering, so use Abramowitz & Stegun 7.1.26 (|err| < 1.5e-7, below f32
    # noise); only abs/exp/where -> VPU+EUP.
    ax = jnp.abs(x)
    t = 1.0 / (1.0 + _EP * ax)
    poly = ((((_A5 * t + _A4) * t + _A3) * t + _A2) * t + _A1) * t
    y = 1.0 - poly * jnp.exp(-ax * ax)
    return jnp.where(x < 0.0, -y, y)


def _gelu_exact(x):
    return 0.5 * x * (1.0 + _erf(x * 0.7071067811865476))


# --------------------------- fused encoder stack ---------------------------

def _encoder_stack_kernel(x_ref, bias_ref, eg_ref, eb_ref,
                          wqkv_ref, bqkv_ref, wo_ref, bo_ref,
                          ln1g_ref, ln1b_ref, w1_ref, b1_ref,
                          w2_ref, b2_ref, ln2g_ref, ln2b_ref,
                          o_ref, state_ref, *, nH, Dh):
    H = nH * Dh
    l = pl.program_id(1)
    n_l = pl.num_programs(1)

    @pl.when(l == 0)
    def _():
        # embedding LayerNorm fused into the first layer step of each batch row
        state_ref[...] = _ln(x_ref[...], eg_ref[...], eb_ref[...])

    x = state_ref[...]                           # residual stream (S, H) f32
    xb = x.astype(jnp.bfloat16)

    # fused QKV projection: one (S,H)x(H,3H) bf16 MXU matmul, f32 accumulate
    qkv = jnp.dot(xb, wqkv_ref[0],
                  preferred_element_type=jnp.float32) + bqkv_ref[0]
    bias = bias_ref[0]                           # (1, S) additive key mask
    scale = 1.0 / float(Dh) ** 0.5

    # per-head attention; q.k^T via dot_general contracting Dh (no k.T).
    # TODO(synk): at real nH/B sizes, move heads to a grid axis or batched
    # einsum; at nH=2 a static unrolled loop keeps layouts trivial.
    ctx = []
    for h in range(nH):
        q = qkv[:, h * Dh:(h + 1) * Dh]
        k = qkv[:, H + h * Dh:H + (h + 1) * Dh]
        v = qkv[:, 2 * H + h * Dh:2 * H + (h + 1) * Dh]
        s = lax.dot_general(q, k, (((1,), (1,)), ((), ())),
                            preferred_element_type=jnp.float32) * scale + bias
        p = jax.nn.softmax(s, axis=-1)
        ctx.append(jnp.dot(p, v, preferred_element_type=jnp.float32))
    ctx = jnp.concatenate(ctx, axis=1)           # (S, H), vreg-resident

    # single output projection over all heads (no VMEM scratch round-trip)
    attn = jnp.dot(ctx.astype(jnp.bfloat16), wo_ref[0],
                   preferred_element_type=jnp.float32) + bo_ref[0]
    h1 = _ln(x + attn, ln1g_ref[0], ln1b_ref[0])

    ff = jnp.dot(h1.astype(jnp.bfloat16), w1_ref[0],
                 preferred_element_type=jnp.float32) + b1_ref[0]
    ff = _gelu_exact(ff)
    ff = jnp.dot(ff.astype(jnp.bfloat16), w2_ref[0],
                 preferred_element_type=jnp.float32) + b2_ref[0]
    out = _ln(h1 + ff, ln2g_ref[0], ln2b_ref[0])

    state_ref[...] = out
    @pl.when(l == n_l - 1)
    def _():
        o_ref[...] = out


def encoder_forward(params, x, attn_bias, *, B, S):
    enc = params["enc"]
    xmap = lambda b, l: (b, 0)
    bmap = lambda b, l: (b, 0, 0)
    cmap = lambda b, l: (0, 0)
    lmap = lambda b, l: (l, 0, 0)
    weights = (enc["wqkv"], enc["bqkv"], enc["wo"], enc["bo"],
               enc["ln1_g"], enc["ln1_b"], enc["w1"], enc["b1"],
               enc["w2"], enc["b2"], enc["ln2_g"], enc["ln2_b"])
    in_specs = ([pl.BlockSpec((S, HIDDEN), xmap),
                 pl.BlockSpec((1, 1, S), bmap),
                 pl.BlockSpec((1, HIDDEN), cmap),
                 pl.BlockSpec((1, HIDDEN), cmap)]
                + [pl.BlockSpec((1,) + w.shape[1:], lmap) for w in weights])
    kernel = functools.partial(_encoder_stack_kernel, nH=N_HEADS, Dh=HEAD_DIM)
    return pl.pallas_call(
        kernel,
        out_shape=jax.ShapeDtypeStruct((B * S, HIDDEN), jnp.float32),
        grid=(B, N_LAYERS),
        in_specs=in_specs,
        out_specs=pl.BlockSpec((S, HIDDEN), xmap),
        scratch_shapes=[pltpu.VMEM((S, HIDDEN), jnp.float32)],
        compiler_params=pltpu.CompilerParams(
            dimension_semantics=("parallel", "arbitrary"),
            vmem_limit_bytes=32 * 1024 * 1024),
    )(x, attn_bias, params["emb_ln_g"], params["emb_ln_b"], *weights)


# --------------------------- fused pooler + sentiment head ---------------------------

def _pool_sent_kernel(cls_ref, pw_ref, pb_ref, sw_ref, sb_ref, o_ref):
    pooled = jnp.tanh(jnp.dot(cls_ref[...].astype(jnp.bfloat16), pw_ref[...],
                              preferred_element_type=jnp.float32) + pb_ref[...])
    o_ref[...] = (jnp.dot(pooled.astype(jnp.bfloat16), sw_ref[...],
                          preferred_element_type=jnp.float32) + sb_ref[...])


def pooler_sentiment(cls, params):
    B, H = cls.shape
    P = params["sent_w_pad"].shape[1]
    return pl.pallas_call(
        _pool_sent_kernel,
        out_shape=jax.ShapeDtypeStruct((B, P), jnp.float32),
        grid=(1,),
        in_specs=[_full((B, H)), _full((H, H)), _full((1, H)),
                  _full((H, P)), _full((1, P))],
        out_specs=_full((B, P)),
    )(cls, params["pool_w"], params["pool_b"],
      params["sent_w_pad"], params["sent_b_pad"])


# --------------------------- CRF kernels ---------------------------
# score/alpha carried as a (T,1) column: cand = score + trans is a pure
# broadcast (the old eye*score cross-lane reduce is gone); per-step reduces are
# sublane reduces; the (1,T)->(T,1) flip is a tiny MXU dot (identity matrix),
# keeping the XLU off the per-step critical path.  Loops are lax.fori_loop
# bounded by the real sequence length, backpointers live in a VMEM scratch.

def _crf_decode_kernel(emis_ref, mask_ref, start_ref, end_ref, trans_ref,
                       tags_ref, bp_ref):
    S, T = emis_ref.shape[1], emis_ref.shape[2]
    trans = trans_ref[...]                       # (T, T) [prev, cur]
    start = start_ref[...]                       # (1, T)
    end = end_ref[...]                           # (1, T)
    mask = mask_ref[0]                           # (S, 1) int32 (prefix mask)
    length = jnp.sum(mask)

    iota_row = lax.broadcasted_iota(jnp.int32, (1, T), 1)
    iota_col = lax.broadcasted_iota(jnp.int32, (T, 1), 0)
    iota_prev = lax.broadcasted_iota(jnp.int32, (T, T), 0)
    eye = (iota_prev == lax.broadcasted_iota(jnp.int32, (T, T), 1)
           ).astype(jnp.float32)

    def to_col(row):                             # (1,T) -> (T,1) via MXU
        return lax.dot_general(eye, row, (((1,), (1,)), ((), ())),
                               preferred_element_type=jnp.float32)

    score0 = to_col(start + emis_ref[0, 0:1, :])

    def fwd_body(t, score):
        cand = score + trans                                       # (T, T)
        best = jnp.max(cand, axis=0, keepdims=True)                # (1, T)
        bp = jnp.min(jnp.where(cand == best, iota_prev, T),
                     axis=0, keepdims=True).astype(jnp.int32)      # (1, T)
        bp_ref[pl.ds(t, 1), :] = bp
        return to_col(best + emis_ref[0, pl.ds(t, 1), :])

    score = lax.fori_loop(1, length, fwd_body, score0)

    fin = score + to_col(end)                                      # (T, 1)
    best_fin = jnp.max(fin)
    last_tag = jnp.min(jnp.where(fin == best_fin, iota_col, T)).astype(jnp.int32)

    iota_s = lax.broadcasted_iota(jnp.int32, (1, S), 1)
    tags0 = jnp.where(iota_s == length - 1, last_tag, 0).astype(jnp.int32)

    def back_body(i, carry):
        tags, cur = carry
        t = length - 1 - i
        bp_row = bp_ref[pl.ds(t, 1), :]                            # (1, T)
        prev = jnp.sum(jnp.where(iota_row == cur, bp_row, 0)).astype(jnp.int32)
        tags = jnp.where(iota_s == t - 1, prev, tags)
        return tags, prev

    tags, _ = lax.fori_loop(0, length - 1, back_body, (tags0, last_tag))
    tags_ref[...] = tags


def crf_decode(emissions, mask, crf_params):
    B, S, T = emissions.shape
    mask_col = mask.reshape(B, S, 1).astype(jnp.int32)
    start = crf_params["start"].reshape(1, T)
    end = crf_params["end"].reshape(1, T)
    trans = crf_params["trans"]
    tags = pl.pallas_call(
        _crf_decode_kernel,
        out_shape=jax.ShapeDtypeStruct((B, S), jnp.int32),
        grid=(B,),
        in_specs=[pl.BlockSpec((1, S, T), lambda b: (b, 0, 0)),
                  pl.BlockSpec((1, S, 1), lambda b: (b, 0, 0)),
                  pl.BlockSpec((1, T), lambda b: (0, 0)),
                  pl.BlockSpec((1, T), lambda b: (0, 0)),
                  pl.BlockSpec((T, T), lambda b: (0, 0))],
        out_specs=pl.BlockSpec((1, S), lambda b: (b, 0)),
        scratch_shapes=[pltpu.VMEM((S, T), jnp.int32)],
        compiler_params=pltpu.CompilerParams(
            dimension_semantics=("parallel",)),
    )(emissions, mask_col, start, end, trans)
    # TODO(synk): torchcrf .decode returns variable-length python lists; here
    # padded positions are filled with tag 0 ('O') in a dense [B, S] array.
    return tags


def _crf_loss_kernel(emis_ref, tags_ref, mask_ref, start_ref, end_ref,
                     trans_ref, llh_ref):
    S, T = emis_ref.shape[1], emis_ref.shape[2]
    emis = emis_ref[0]                           # (S, T)
    tags_col = tags_ref[0]                       # (S, 1) i32
    mask_i = mask_ref[0]                         # (S, 1) i32
    maskf = mask_i.astype(jnp.float32)
    start = start_ref[...]
    end = end_ref[...]
    trans = trans_ref[...]

    iota_t_row = lax.broadcasted_iota(jnp.int32, (S, T), 1)
    iota_s_col = lax.broadcasted_iota(jnp.int32, (S, 1), 0)
    iota_p = lax.broadcasted_iota(jnp.int32, (T, T), 0)
    eye = (iota_p == lax.broadcasted_iota(jnp.int32, (T, T), 1)
           ).astype(jnp.float32)

    def to_col(row):
        return lax.dot_general(eye, row, (((1,), (1,)), ((), ())),
                               preferred_element_type=jnp.float32)

    onehot = (iota_t_row == tags_col).astype(jnp.float32)          # (S, T)

    # ---- gold path score (vectorized, no loop) ----
    emis_score = jnp.sum(jnp.sum(emis * onehot, axis=1, keepdims=True) * maskf)
    prev_oh, cur_oh = onehot[:-1], onehot[1:]
    trans_rows = jnp.dot(prev_oh, trans, preferred_element_type=jnp.float32)
    trans_score = jnp.sum(jnp.sum(trans_rows * cur_oh, axis=1, keepdims=True)
                          * maskf[1:])
    start_score = jnp.sum(start * onehot[0:1, :])
    length = jnp.sum(mask_i)
    # NOTE: assumes the attention mask is a contiguous prefix (as torchcrf).
    last_oh = jnp.sum(jnp.where(iota_s_col == length - 1, onehot, 0.0),
                      axis=0, keepdims=True)
    end_score = jnp.sum(end * last_oh)
    gold = start_score + emis_score + trans_score + end_score

    # ---- log-partition: forward algorithm, alpha as (T,1) column ----
    alpha0 = to_col(start + emis[0:1, :])

    def body(t, alpha):
        cand = alpha + trans
        m = jnp.max(cand, axis=0, keepdims=True)
        lse = m + jnp.log(jnp.sum(jnp.exp(cand - m), axis=0, keepdims=True))
        return to_col(lse + emis_ref[0, pl.ds(t, 1), :])

    alpha = lax.fori_loop(1, length, body, alpha0)
    fin = alpha + to_col(end)
    mfin = jnp.max(fin)
    log_z = mfin + jnp.log(jnp.sum(jnp.exp(fin - mfin)))
    llh_ref[...] = jnp.reshape(gold - log_z, (1, 1))


def crf_loss(emissions, labels, mask, crf_params):
    B, S, T = emissions.shape
    tags_col = labels.reshape(B, S, 1).astype(jnp.int32)
    mask_col = mask.reshape(B, S, 1).astype(jnp.int32)
    start = crf_params["start"].reshape(1, T)
    end = crf_params["end"].reshape(1, T)
    trans = crf_params["trans"]
    llh = pl.pallas_call(
        _crf_loss_kernel,
        out_shape=jax.ShapeDtypeStruct((B, 1), jnp.float32),
        grid=(B,),
        in_specs=[pl.BlockSpec((1, S, T), lambda b: (b, 0, 0)),
                  pl.BlockSpec((1, S, 1), lambda b: (b, 0, 0)),
                  pl.BlockSpec((1, S, 1), lambda b: (b, 0, 0)),
                  pl.BlockSpec((1, T), lambda b: (0, 0)),
                  pl.BlockSpec((1, T), lambda b: (0, 0)),
                  pl.BlockSpec((T, T), lambda b: (0, 0))],
        out_specs=pl.BlockSpec((1, 1), lambda b: (b, 0)),
        compiler_params=pltpu.CompilerParams(
            dimension_semantics=("parallel",)),
    )(emissions, tags_col, mask_col, start, end, trans)
    # torchcrf default reduction='sum'; the .mean() in the reference acts on a
    # 0-d tensor, so loss = -(sum over batch of llh).
    return -jnp.sum(llh)


# --------------------------- synthetic XLM-R params ---------------------------

def init_params(key):
    def dense(k, fi, fo):
        return jax.random.normal(k, (fi, fo), jnp.float32) * 0.02

    keys = iter(jax.random.split(key, 8 + 6 * N_LAYERS))
    p = {
        "word_emb": jax.random.normal(next(keys), (VOCAB, HIDDEN)) * 0.02,
        "pos_emb": jax.random.normal(next(keys), (MAX_POS, HIDDEN)) * 0.02,
        "type_emb": jax.random.normal(next(keys), (1, HIDDEN)) * 0.02,
        "emb_ln_g": jnp.ones((1, HIDDEN), jnp.float32),
        "emb_ln_b": jnp.zeros((1, HIDDEN), jnp.float32),
        "pool_w": dense(next(keys), HIDDEN, HIDDEN).astype(jnp.bfloat16),
        "pool_b": jnp.zeros((1, HIDDEN), jnp.float32),
        "crf": {
            "start": jax.random.uniform(next(keys), (NUM_LABELS_NER,),
                                        minval=-0.1, maxval=0.1),
            "end": jax.random.uniform(next(keys), (NUM_LABELS_NER,),
                                      minval=-0.1, maxval=0.1),
            "trans": jax.random.uniform(next(keys),
                                        (NUM_LABELS_NER, NUM_LABELS_NER),
                                        minval=-0.1, maxval=0.1),
        },
    }
    sent_w = dense(next(keys), HIDDEN, NUM_LABELS_SENT)
    p["sent_w_pad"] = (jnp.zeros((HIDDEN, SENT_PAD), jnp.float32)
                       .at[:, :NUM_LABELS_SENT].set(sent_w)
                       .astype(jnp.bfloat16))
    p["sent_b_pad"] = jnp.zeros((1, SENT_PAD), jnp.float32)

    wqkv, wo, w1, w2 = [], [], [], []
    for _ in range(N_LAYERS):
        wq = dense(next(keys), HIDDEN, HIDDEN)
        wk = dense(next(keys), HIDDEN, HIDDEN)
        wv = dense(next(keys), HIDDEN, HIDDEN)
        wqkv.append(jnp.concatenate([wq, wk, wv], axis=1))   # (H, 3H)
        wo.append(dense(next(keys), HIDDEN, HIDDEN))
        w1.append(dense(next(keys), HIDDEN, FFN_DIM))
        w2.append(dense(next(keys), FFN_DIM, HIDDEN))
    L = N_LAYERS
    p["enc"] = {
        "wqkv": jnp.stack(wqkv).astype(jnp.bfloat16),         # (L, H, 3H)
        "bqkv": jnp.zeros((L, 1, 3 * HIDDEN), jnp.float32),
        "wo": jnp.stack(wo).astype(jnp.bfloat16),             # (L, H, H)
        "bo": jnp.zeros((L, 1, HIDDEN), jnp.float32),
        "ln1_g": jnp.ones((L, 1, HIDDEN), jnp.float32),
        "ln1_b": jnp.zeros((L, 1, HIDDEN), jnp.float32),
        "w1": jnp.stack(w1).astype(jnp.bfloat16),             # (L, H, F)
        "b1": jnp.zeros((L, 1, FFN_DIM), jnp.float32),
        "w2": jnp.stack(w2).astype(jnp.bfloat16),             # (L, F, H)
        "b2": jnp.zeros((L, 1, HIDDEN), jnp.float32),
        "ln2_g": jnp.ones((L, 1, HIDDEN), jnp.float32),
        "ln2_b": jnp.zeros((L, 1, HIDDEN), jnp.float32),
    }
    return p


# --------------------------- model forward ---------------------------

def xlmr_encoder(params, input_ids, attention_mask):
    B, S = input_ids.shape
    # embedding lookups are gather glue kept in plain JAX; everything else
    # (emb LN, attention, FFN, all layers) runs in ONE fused Pallas call.
    emb = (jnp.take(params["word_emb"], input_ids, axis=0)
           + params["pos_emb"][:S][None, :, :]
           + params["type_emb"][0][None, None, :])
    # additive key-mask bias, hoisted once per forward (shared by all layers)
    attn_bias = ((1.0 - attention_mask.astype(jnp.float32)) * (-1e9)
                 ).reshape(B, 1, S)
    x = encoder_forward(params, emb.reshape(B * S, HIDDEN).astype(jnp.float32),
                        attn_bias, B=B, S=S)
    return x.reshape(B, S, HIDDEN)


@functools.partial(jax.jit, static_argnames=("task_name",))
def multitask_forward(params, input_ids, attention_mask, task_name, labels=None):
    seq_out = xlmr_encoder(params, input_ids, attention_mask)
    # dropout == identity in the inference forward pass
    if task_name == "ner":
        # TODO(synk): the reference feeds the hidden_size-wide sequence_output
        # straight into CRF(num_labels_ner) (only shape-checks when
        # hidden_size == num_labels_ner); we use the first num_labels_ner
        # features as the emission scores.
        emissions = seq_out[..., :NUM_LABELS_NER]
        if labels is not None:
            return crf_loss(emissions, labels, attention_mask, params["crf"])
        return crf_decode(emissions, attention_mask, params["crf"])
    elif task_name == "sentiment":
        cls = seq_out[:, 0, :]
        logits_pad = pooler_sentiment(cls, params)      # (B, 128) lane-dense
        return logits_pad[:, :NUM_LABELS_SENT]
    else:
        raise ValueError(f"Invalid task name: {task_name}")


if __name__ == "__main__":
    key = jax.random.PRNGKey(0)
    pkey, ikey, lkey = jax.random.split(key, 3)
    params = init_params(pkey)

    B, S = 2, 8
    input_ids = jax.random.randint(ikey, (B, S), 0, VOCAB, dtype=jnp.int32)
    attention_mask = jnp.ones((B, S), jnp.int32).at[1, -1].set(0)  # one pad
    labels = jax.random.randint(lkey, (B, S), 0, NUM_LABELS_NER, dtype=jnp.int32)

    sent_logits = multitask_forward(params, input_ids, attention_mask, "sentiment")
    ner_loss = multitask_forward(params, input_ids, attention_mask, "ner", labels)
    ner_tags = multitask_forward(params, input_ids, attention_mask, "ner")

    jax.block_until_ready((sent_logits, ner_loss, ner_tags))
    assert sent_logits.shape == (B, NUM_LABELS_SENT)
    assert ner_loss.shape == ()
    assert bool(jnp.isfinite(ner_loss))
    assert ner_tags.shape == (B, S)
    assert bool(jnp.all((ner_tags >= 0) & (ner_tags < NUM_LABELS_NER)))
    print("KERNEL_OK")
</pallas_src>

<mosaic_0001>
module attributes {stable_mosaic.version = 11 : i64} {
  func.func @_pool_sent_kernel(%arg0: i32, %arg1: memref<2x32xf32, #tpu.memory_space<vmem>>, %arg2: memref<32x32xbf16, #tpu.memory_space<vmem>>, %arg3: memref<1x32xf32, #tpu.memory_space<vmem>>, %arg4: memref<32x128xbf16, #tpu.memory_space<vmem>>, %arg5: memref<1x128xf32, #tpu.memory_space<vmem>>, %arg6: memref<2x128xf32, #tpu.memory_space<vmem>>) attributes {dimension_semantics = [#tpu.dimension_semantics<arbitrary>], iteration_bounds = array<i64: 1>, scalar_prefetch = 0 : i64, scratch_operands = 0 : i64, tpu.core_type = #tpu.core_type<tc>, window_params = [{pipeline_mode = #tpu.pipeline_mode<synchronous>, transform_indices = @transform_0, window_bounds = array<i64: 2, 32>}, {pipeline_mode = #tpu.pipeline_mode<synchronous>, transform_indices = @transform_1, window_bounds = array<i64: 32, 32>}, {pipeline_mode = #tpu.pipeline_mode<synchronous>, transform_indices = @transform_2, window_bounds = array<i64: 1, 32>}, {pipeline_mode = #tpu.pipeline_mode<synchronous>, transform_indices = @transform_3, window_bounds = array<i64: 32, 128>}, {pipeline_mode = #tpu.pipeline_mode<synchronous>, transform_indices = @transform_4, window_bounds = array<i64: 1, 128>}, {pipeline_mode = #tpu.pipeline_mode<synchronous>, transform_indices = @transform_5, window_bounds = array<i64: 2, 128>}]} {
    %c0 = arith.constant 0 : index
    %c0_0 = arith.constant 0 : index
    %0 = vector.load %arg1[%c0, %c0_0] : memref<2x32xf32, #tpu.memory_space<vmem>>, vector<2x32xf32>
    %1 = arith.truncf %0 : vector<2x32xf32> to vector<2x32xbf16>
    %c0_1 = arith.constant 0 : index
    %c0_2 = arith.constant 0 : index
    %2 = vector.load %arg2[%c0_1, %c0_2] : memref<32x32xbf16, #tpu.memory_space<vmem>>, vector<32x32xbf16>
    %cst = arith.constant dense<0.000000e+00> : vector<2x32xf32>
    %3 = tpu.matmul %1, %2, %cst {dimension_numbers = #tpu.dot_dimension_numbers<[1], [0], [0], [1], [0, 0, 1, 1], [], []>} : vector<2x32xbf16>, vector<32x32xbf16>, vector<2x32xf32> -> vector<2x32xf32>
    %c0_3 = arith.constant 0 : index
    %c0_4 = arith.constant 0 : index
    %4 = vector.load %arg3[%c0_3, %c0_4] : memref<1x32xf32, #tpu.memory_space<vmem>>, vector<1x32xf32>
    %5 = vector.broadcast %4 : vector<1x32xf32> to vector<2x32xf32>
    %6 = arith.addf %3, %5 : vector<2x32xf32>
    %7 = math.tanh %6 : vector<2x32xf32>
    %8 = arith.truncf %7 : vector<2x32xf32> to vector<2x32xbf16>
    %c0_5 = arith.constant 0 : index
    %c0_6 = arith.constant 0 : index
    %9 = vector.load %arg4[%c0_5, %c0_6] : memref<32x128xbf16, #tpu.memory_space<vmem>>, vector<32x128xbf16>
    %cst_7 = arith.constant dense<0.000000e+00> : vector<2x128xf32>
    %10 = tpu.matmul %8, %9, %cst_7 {dimension_numbers = #tpu.dot_dimension_numbers<[1], [0], [0], [1], [0, 0, 1, 1], [], []>} : vector<2x32xbf16>, vector<32x128xbf16>, vector<2x128xf32> -> vector<2x128xf32>
    %c0_8 = arith.constant 0 : index
    %c0_9 = arith.constant 0 : index
    %11 = vector.load %arg5[%c0_8, %c0_9] : memref<1x128xf32, #tpu.memory_space<vmem>>, vector<1x128xf32>
    %12 = vector.broadcast %11 : vector<1x128xf32> to vector<2x128xf32>
    %13 = arith.addf %10, %12 : vector<2x128xf32>
    %c0_10 = arith.constant 0 : index
    %c0_11 = arith.constant 0 : index
    %14 = vector.load %arg6[%c0_10, %c0_11] : memref<2x128xf32, #tpu.memory_space<vmem>>, vector<2x128xf32>
    tpu.vector_store %arg6[%c0_10, %c0_11], %13 {strides = array<i32>} : memref<2x128xf32, #tpu.memory_space<vmem>>, vector<2x128xf32>,
    return
  }
  func.func @transform_0(%arg0: i32) -> (i32, i32) {
    %c0_i32 = arith.constant 0 : i32
    %c0_i32_0 = arith.constant 0 : i32
    %c0_i32_1 = arith.constant 0 : i32
    return %c0_i32, %c0_i32_0 : i32, i32
  }
  func.func @transform_1(%arg0: i32) -> (i32, i32) {
    %c0_i32 = arith.constant 0 : i32
    %c0_i32_0 = arith.constant 0 : i32
    %c0_i32_1 = arith.constant 0 : i32
    return %c0_i32, %c0_i32_0 : i32, i32
  }
  func.func @transform_2(%arg0: i32) -> (i32, i32) {
    %c0_i32 = arith.constant 0 : i32
    %c0_i32_0 = arith.constant 0 : i32
    %c0_i32_1 = arith.constant 0 : i32
    return %c0_i32, %c0_i32_0 : i32, i32
  }
  func.func @transform_3(%arg0: i32) -> (i32, i32) {
    %c0_i32 = arith.constant 0 : i32
    %c0_i32_0 = arith.constant 0 : i32
    %c0_i32_1 = arith.constant 0 : i32
    return %c0_i32, %c0_i32_0 : i32, i32
  }
  func.func @transform_4(%arg0: i32) -> (i32, i32) {
    %c0_i32 = arith.constant 0 : i32
    %c0_i32_0 = arith.constant 0 : i32
    %c0_i32_1 = arith.constant 0 : i32
    return %c0_i32, %c0_i32_0 : i32, i32
  }
  func.func @transform_5(%arg0: i32) -> (i32, i32) {
    %c0_i32 = arith.constant 0 : i32
    %c0_i32_0 = arith.constant 0 : i32
    %c0_i32_1 = arith.constant 0 : i32
    return %c0_i32, %c0_i32_0 : i32, i32
  }
}

module attributes {stable_mosaic.version = 11 : i64} {
  func.func @_encoder_stack_kernel(%arg0: i32, %arg1: i32, %arg2: memref<8x32xf32, #tpu.memory_space<vmem>>, %arg3: memref<1x1x8xf32, #tpu.memory_space<vmem>>, %arg4: memref<1x32xf32, #tpu.memory_space<vmem>>, %arg5: memref<1x32xf32, #tpu.memory_space<vmem>>, %arg6: memref<1x32x96xbf16, #tpu.memory_space<vmem>>, %arg7: memref<1x1x96xf32, #tpu.memory_space<vmem>>, %arg8: memref<1x32x32xbf16, #tpu.memory_space<vmem>>, %arg9: memref<1x1x32xf32, #tpu.memory_space<vmem>>, %arg10: memref<1x1x32xf32, #tpu.memory_space<vmem>>, %arg11: memref<1x1x32xf32, #tpu.memory_space<vmem>>, %arg12: memref<1x32x64xbf16, #tpu.memory_space<vmem>>, %arg13: memref<1x1x64xf32, #tpu.memory_space<vmem>>, %arg14: memref<1x64x32xbf16, #tpu.memory_space<vmem>>, %arg15: memref<1x1x32xf32, #tpu.memory_space<vmem>>, %arg16: memref<1x1x32xf32, #tpu.memory_space<vmem>>, %arg17: memref<1x1x32xf32, #tpu.memory_space<vmem>>, %arg18: memref<8x32xf32, #tpu.memory_space<vmem>>, %arg19: memref<8x32xf32, #tpu.memory_space<vmem>>) attributes {dimension_semantics = [#tpu.dimension_semantics<parallel>, #tpu.dimension_semantics<arbitrary>], iteration_bounds = array<i64: 2, 2>, scalar_prefetch = 0 : i64, scratch_operands = 1 : i64, tpu.core_type = #tpu.core_type<tc>, window_params = [{transform_indices = @transform_0, window_bounds = array<i64: 8, 32>}, {transform_indices = @transform_1, window_bounds = array<i64: 1, 1, 8>}, {pipeline_mode = #tpu.pipeline_mode<synchronous>, transform_indices = @transform_2, window_bounds = array<i64: 1, 32>}, {pipeline_mode = #tpu.pipeline_mode<synchronous>, transform_indices = @transform_3, window_bounds = array<i64: 1, 32>}, {transform_indices = @transform_4, window_bounds = array<i64: 1, 32, 96>}, {transform_indices = @transform_5, window_bounds = array<i64: 1, 1, 96>}, {transform_indices = @transform_6, window_bounds = array<i64: 1, 32, 32>}, {transform_indices = @transform_7, window_bounds = array<i64: 1, 1, 32>}, {transform_indices = @transform_8, window_bounds = array<i64: 1, 1, 32>}, {transform_indices = @transform_9, window_bounds = array<i64: 1, 1, 32>}, {transform_indices = @transform_10, window_bounds = array<i64: 1, 32, 64>}, {transform_indices = @transform_11, window_bounds = array<i64: 1, 1, 64>}, {transform_indices = @transform_12, window_bounds = array<i64: 1, 64, 32>}, {transform_indices = @transform_13, window_bounds = array<i64: 1, 1, 32>}, {transform_indices = @transform_14, window_bounds = array<i64: 1, 1, 32>}, {transform_indices = @transform_15, window_bounds = array<i64: 1, 1, 32>}, {transform_indices = @transform_16, window_bounds = array<i64: 8, 32>}]} {
    %c0_i32 = arith.constant 0 : i32
    %0 = arith.cmpi eq, %arg1, %c0_i32 : i32
    %1 = arith.extui %0 : i1 to i32
    %c0_i32_0 = arith.constant 0 : i32
    %2 = arith.cmpi ne, %1, %c0_i32_0 : i32
    scf.if %2 {
      %c0_84 = arith.constant 0 : index
      %c0_85 = arith.constant 0 : index
      %177 = vector.load %arg2[%c0_84, %c0_85] : memref<8x32xf32, #tpu.memory_space<vmem>>, vector<8x32xf32>
      %c0_86 = arith.constant 0 : index
      %c0_87 = arith.constant 0 : index
      %178 = vector.load %arg4[%c0_86, %c0_87] : memref<1x32xf32, #tpu.memory_space<vmem>>, vector<1x32xf32>
      %c0_88 = arith.constant 0 : index
      %c0_89 = arith.constant 0 : index
      %179 = vector.load %arg5[%c0_88, %c0_89] : memref<1x32xf32, #tpu.memory_space<vmem>>, vector<1x32xf32>
      %cst_90 = arith.constant dense<0.000000e+00> : vector<8xf32>
      %180 = vector.multi_reduction <add>, %177, %cst_90 [1] : vector<8x32xf32> to vector<8xf32>
      %181 = vector.shape_cast %180 : vector<8xf32> to vector<8x1xf32>
      %cst_91 = arith.constant 3.200000e+01 : f32
      %182 = vector.broadcast %cst_91 : f32 to vector<8x1xf32>
      %183 = arith.divf %181, %182 : vector<8x1xf32>
      %184 = vector.broadcast %183 : vector<8x1xf32> to vector<8x32xf32>
      %185 = arith.subf %177, %184 : vector<8x32xf32>
      %186 = arith.mulf %185, %185 : vector<8x32xf32>
      %cst_92 = arith.constant dense<0.000000e+00> : vector<8xf32>
      %187 = vector.multi_reduction <add>, %186, %cst_92 [1] : vector<8x32xf32> to vector<8xf32>
      %188 = vector.shape_cast %187 : vector<8xf32> to vector<8x1xf32>
      %cst_93 = arith.constant 3.200000e+01 : f32
      %189 = vector.broadcast %cst_93 : f32 to vector<8x1xf32>
      %190 = arith.divf %188, %189 : vector<8x1xf32>
      %191 = vector.broadcast %183 : vector<8x1xf32> to vector<8x32xf32>
      %192 = arith.subf %177, %191 : vector<8x32xf32>
      %cst_94 = arith.constant 9.99999974E-6 : f32
      %193 = vector.broadcast %cst_94 : f32 to vector<8x1xf32>
      %194 = arith.addf %190, %193 : vector<8x1xf32>
      %195 = math.rsqrt %194 : vector<8x1xf32>
      %196 = vector.broadcast %195 : vector<8x1xf32> to vector<8x32xf32>
      %197 = arith.mulf %192, %196 : vector<8x32xf32>
      %198 = vector.broadcast %178 : vector<1x32xf32> to vector<8x32xf32>
      %199 = arith.mulf %197, %198 : vector<8x32xf32>
      %200 = vector.broadcast %179 : vector<1x32xf32> to vector<8x32xf32>
      %201 = arith.addf %199, %200 : vector<8x32xf32>
      %c0_95 = arith.constant 0 : index
      %c0_96 = arith.constant 0 : index
      %202 = vector.load %arg19[%c0_95, %c0_96] : memref<8x32xf32, #tpu.memory_space<vmem>>, vector<8x32xf32>
      tpu.vector_store %arg19[%c0_95, %c0_96], %201 {strides = array<i32>} : memref<8x32xf32, #tpu.memory_space<vmem>>, vector<8x32xf32>,
    } else {
    }
    %c0 = arith.constant 0 : index
    %c0_1 = arith.constant 0 : index
    %3 = vector.load %arg19[%c0, %c0_1] : memref<8x32xf32, #tpu.memory_space<vmem>>, vector<8x32xf32>
    %4 = arith.truncf %3 : vector<8x32xf32> to vector<8x32xbf16>
    %c0_2 = arith.constant 0 : index
    %c0_3 = arith.constant 0 : index
    %c0_4 = arith.constant 0 : index
    %5 = vector.load %arg6[%c0_2, %c0_3, %c0_4] : memref<1x32x96xbf16, #tpu.memory_space<vmem>>, vector<1x32x96xbf16>
    %6 = vector.shape_cast %5 : vector<1x32x96xbf16> to vector<32x96xbf16>
    %cst = arith.constant dense<0.000000e+00> : vector<8x96xf32>
    %7 = tpu.matmul %4, %6, %cst {dimension_numbers = #tpu.dot_dimension_numbers<[1], [0], [0], [1], [0, 0, 1, 1], [], []>} : vector<8x32xbf16>, vector<32x96xbf16>, vector<8x96xf32> -> vector<8x96xf32>
    %c0_5 = arith.constant 0 : index
    %c0_6 = arith.constant 0 : index
    %c0_7 = arith.constant 0 : index
    %8 = vector.load %arg7[%c0_5, %c0_6, %c0_7] : memref<1x1x96xf32, #tpu.memory_space<vmem>>, vector<1x1x96xf32>
    %9 = vector.shape_cast %8 : vector<1x1x96xf32> to vector<1x96xf32>
    %10 = vector.broadcast %9 : vector<1x96xf32> to vector<8x96xf32>
    %11 = arith.addf %7, %10 : vector<8x96xf32>
    %c0_8 = arith.constant 0 : index
    %c0_9 = arith.constant 0 : index
    %c0_10 = arith.constant 0 : index
    %12 = vector.load %arg3[%c0_8, %c0_9, %c0_10] : memref<1x1x8xf32, #tpu.memory_space<vmem>>, vector<1x1x8xf32>
    %13 = vector.shape_cast %12 : vector<1x1x8xf32> to vector<1x8xf32>
    %14 = vector.extract_strided_slice %11 {offsets = [0, 0], sizes = [8, 16], strides = [1, 1]} : vector<8x96xf32> to vector<8x16xf32>
    %15 = vector.extract_strided_slice %11 {offsets = [0, 32], sizes = [8, 16], strides = [1, 1]} : vector<8x96xf32> to vector<8x16xf32>
    %16 = vector.extract_strided_slice %11 {offsets = [0, 64], sizes = [8, 16], strides = [1, 1]} : vector<8x96xf32> to vector<8x16xf32>
    %cst_11 = arith.constant dense<0.000000e+00> : vector<8x8xf32>
    %17 = tpu.matmul %14, %15, %cst_11 {dimension_numbers = #tpu.dot_dimension_numbers<[1], [1], [0], [0], [0, 0, 1, 0], [], []>} : vector<8x16xf32>, vector<8x16xf32>, vector<8x8xf32> -> vector<8x8xf32>
    %cst_12 = arith.constant 2.500000e-01 : f32
    %18 = vector.broadcast %cst_12 : f32 to vector<8x8xf32>
    %19 = arith.mulf %17, %18 : vector<8x8xf32>
    %20 = vector.broadcast %13 : vector<1x8xf32> to vector<8x8xf32>
    %21 = arith.addf %19, %20 : vector<8x8xf32>
    %cst_13 = arith.constant dense<0xFF800000> : vector<8xf32>
    %22 = vector.multi_reduction <maximumf>, %21, %cst_13 [1] : vector<8x8xf32> to vector<8xf32>
    %cst_14 = arith.constant 0xFF800000 : f32
    %23 = vector.broadcast %cst_14 : f32 to vector<8xf32>
    %24 = arith.maximumf %23, %22 : vector<8xf32>
    %25 = vector.shape_cast %24 : vector<8xf32> to vector<8x1xf32>
    %26 = vector.broadcast %25 : vector<8x1xf32> to vector<8x8xf32>
    %27 = arith.subf %21, %26 : vector<8x8xf32>
    %28 = math.exp %27 : vector<8x8xf32>
    %cst_15 = arith.constant dense<0.000000e+00> : vector<8xf32>
    %29 = vector.multi_reduction <add>, %28, %cst_15 [1] : vector<8x8xf32> to vector<8xf32>
    %30 = vector.shape_cast %29 : vector<8xf32> to vector<8x1xf32>
    %31 = vector.broadcast %30 : vector<8x1xf32> to vector<8x8xf32>
    %32 = arith.divf %28, %31 : vector<8x8xf32>
    %cst_16 = arith.constant dense<0.000000e+00> : vector<8x16xf32>
    %33 = tpu.matmul %32, %16, %cst_16 {dimension_numbers = #tpu.dot_dimension_numbers<[1], [0], [0], [1], [0, 0, 1, 1], [], []>} : vector<8x8xf32>, vector<8x16xf32>, vector<8x16xf32> -> vector<8x16xf32>
    %34 = vector.extract_strided_slice %11 {offsets = [0, 16], sizes = [8, 16], strides = [1, 1]} : vector<8x96xf32> to vector<8x16xf32>
    %35 = vector.extract_strided_slice %11 {offsets = [0, 48], sizes = [8, 16], strides = [1, 1]} : vector<8x96xf32> to vector<8x16xf32>
    %36 = vector.extract_strided_slice %11 {offsets = [0, 80], sizes = [8, 16], strides = [1, 1]} : vector<8x96xf32> to vector<8x16xf32>
    %cst_17 = arith.constant dense<0.000000e+00> : vector<8x8xf32>
    %37 = tpu.matmul %34, %35, %cst_17 {dimension_numbers = #tpu.dot_dimension_numbers<[1], [1], [0], [0], [0, 0, 1, 0], [], []>} : vector<8x16xf32>, vector<8x16xf32>, vector<8x8xf32> -> vector<8x8xf32>
    %cst_18 = arith.constant 2.500000e-01 : f32
    %38 = vector.broadcast %cst_18 : f32 to vector<8x8xf32>
    %39 = arith.mulf %37, %38 : vector<8x8xf32>
    %40 = vector.broadcast %13 : vector<1x8xf32> to vector<8x8xf32>
    %41 = arith.addf %39, %40 : vector<8x8xf32>
    %cst_19 = arith.constant dense<0xFF800000> : vector<8xf32>
    %42 = vector.multi_reduction <maximumf>, %41, %cst_19 [1] : vector<8x8xf32> to vector<8xf32>
    %cst_20 = arith.constant 0xFF800000 : f32
    %43 = vector.broadcast %cst_20 : f32 to vector<8xf32>
    %44 = arith.maximumf %43, %42 : vector<8xf32>
    %45 = vector.shape_cast %44 : vector<8xf32> to vector<8x1xf32>
    %46 = vector.broadcast %45 : vector<8x1xf32> to vector<8x8xf32>
    %47 = arith.subf %41, %46 : vector<8x8xf32>
    %48 = math.exp %47 : vector<8x8xf32>
    %cst_21 = arith.constant dense<0.000000e+00> : vector<8xf32>
    %49 = vector.multi_reduction <add>, %48, %cst_21 [1] : vector<8x8xf32> to vector<8xf32>
    %50 = vector.shape_cast %49 : vector<8xf32> to vector<8x1xf32>
    %51 = vector.broadcast %50 : vector<8x1xf32> to vector<8x8xf32>
    %52 = arith.divf %48, %51 : vector<8x8xf32>
    %cst_22 = arith.constant dense<0.000000e+00> : vector<8x16xf32>
    %53 = tpu.matmul %52, %36, %cst_22 {dimension_numbers = #tpu.dot_dimension_numbers<[1], [0], [0], [1], [0, 0, 1, 1], [], []>} : vector<8x8xf32>, vector<8x16xf32>, vector<8x16xf32> -> vector<8x16xf32>
    %54 = tpu.concatenate %33, %53 in 1 : vector<8x16xf32>, vector<8x16xf32> -> vector<8x32xf32>
    %55 = arith.truncf %54 : vector<8x32xf32> to vector<8x32xbf16>
    %c0_23 = arith.constant 0 : index
    %c0_24 = arith.constant 0 : index
    %c0_25 = arith.constant 0 : index
    %56 = vector.load %arg8[%c0_23, %c0_24, %c0_25] : memref<1x32x32xbf16, #tpu.memory_space<vmem>>, vector<1x32x32xbf16>
    %57 = vector.shape_cast %56 : vector<1x32x32xbf16> to vector<32x32xbf16>
    %cst_26 = arith.constant dense<0.000000e+00> : vector<8x32xf32>
    %58 = tpu.matmul %55, %57, %cst_26 {dimension_numbers = #tpu.dot_dimension_numbers<[1], [0], [0], [1], [0, 0, 1, 1], [], []>} : vector<8x32xbf16>, vector<32x32xbf16>, vector<8x32xf32> -> vector<8x32xf32>
    %c0_27 = arith.constant 0 : index
    %c0_28 = arith.constant 0 : index
    %c0_29 = arith.constant 0 : index
    %59 = vector.load %arg9[%c0_27, %c0_28, %c0_29] : memref<1x1x32xf32, #tpu.memory_space<vmem>>, vector<1x1x32xf32>
    %60 = vector.shape_cast %59 : vector<1x1x32xf32> to vector<1x32xf32>
    %61 = vector.broadcast %60 : vector<1x32xf32> to vector<8x32xf32>
    %62 = arith.addf %58, %61 : vector<8x32xf32>
    %63 = arith.addf %3, %62 : vector<8x32xf32>
    %c0_30 = arith.constant 0 : index
    %c0_31 = arith.constant 0 : index
    %c0_32 = arith.constant 0 : index
    %64 = vector.load %arg10[%c0_30, %c0_31, %c0_32] : memref<1x1x32xf32, #tpu.memory_space<vmem>>, vector<1x1x32xf32>
    %65 = vector.shape_cast %64 : vector<1x1x32xf32> to vector<1x32xf32>
    %c0_33 = arith.constant 0 : index
    %c0_34 = arith.constant 0 : index
    %c0_35 = arith.constant 0 : index
    %66 = vector.load %arg11[%c0_33, %c0_34, %c0_35] : memref<1x1x32xf32, #tpu.memory_space<vmem>>, vector<1x1x32xf32>
    %67 = vector.shape_cast %66 : vector<1x1x32xf32> to vector<1x32xf32>
    %cst_36 = arith.constant dense<0.000000e+00> : vector<8xf32>
    %68 = vector.multi_reduction <add>, %63, %cst_36 [1] : vector<8x32xf32> to vector<8xf32>
    %69 = vector.shape_cast %68 : vector<8xf32> to vector<8x1xf32>
    %cst_37 = arith.constant 3.200000e+01 : f32
    %70 = vector.broadcast %cst_37 : f32 to vector<8x1xf32>
    %71 = arith.divf %69, %70 : vector<8x1xf32>
    %72 = vector.broadcast %71 : vector<8x1xf32> to vector<8x32xf32>
    %73 = arith.subf %63, %72 : vector<8x32xf32>
    %74 = arith.mulf %73, %73 : vector<8x32xf32>
    %cst_38 = arith.constant dense<0.000000e+00> : vector<8xf32>
    %75 = vector.multi_reduction <add>, %74, %cst_38 [1] : vector<8x32xf32> to vector<8xf32>
    %76 = vector.shape_cast %75 : vector<8xf32> to vector<8x1xf32>
    %cst_39 = arith.constant 3.200000e+01 : f32
    %77 = vector.broadcast %cst_39 : f32 to vector<8x1xf32>
    %78 = arith.divf %76, %77 : vector<8x1xf32>
    %79 = vector.broadcast %71 : vector<8x1xf32> to vector<8x32xf32>
    %80 = arith.subf %63, %79 : vector<8x32xf32>
    %cst_40 = arith.constant 9.99999974E-6 : f32
    %81 = vector.broadcast %cst_40 : f32 to vector<8x1xf32>
    %82 = arith.addf %78, %81 : vector<8x1xf32>
    %83 = math.rsqrt %82 : vector<8x1xf32>
    %84 = vector.broadcast %83 : vector<8x1xf32> to vector<8x32xf32>
    %85 = arith.mulf %80, %84 : vector<8x32xf32>
    %86 = vector.broadcast %65 : vector<1x32xf32> to vector<8x32xf32>
    %87 = arith.mulf %85, %86 : vector<8x32xf32>
    %88 = vector.broadcast %67 : vector<1x32xf32> to vector<8x32xf32>
    %89 = arith.addf %87, %88 : vector<8x32xf32>
    %90 = arith.truncf %89 : vector<8x32xf32> to vector<8x32xbf16>
    %c0_41 = arith.constant 0 : index
    %c0_42 = arith.constant 0 : index
    %c0_43 = arith.constant 0 : index
    %91 = vector.load %arg12[%c0_41, %c0_42, %c0_43] : memref<1x32x64xbf16, #tpu.memory_space<vmem>>, vector<1x32x64xbf16>
    %92 = vector.shape_cast %91 : vector<1x32x64xbf16> to vector<32x64xbf16>
    %cst_44 = arith.constant dense<0.000000e+00> : vector<8x64xf32>
    %93 = tpu.matmul %90, %92, %cst_44 {dimension_numbers = #tpu.dot_dimension_numbers<[1], [0], [0], [1], [0, 0, 1, 1], [], []>} : vector<8x32xbf16>, vector<32x64xbf16>, vector<8x64xf32> -> vector<8x64xf32>
    %c0_45 = arith.constant 0 : index
    %c0_46 = arith.constant 0 : index
    %c0_47 = arith.constant 0 : index
    %94 = vector.load %arg13[%c0_45, %c0_46, %c0_47] : memref<1x1x64xf32, #tpu.memory_space<vmem>>, vector<1x1x64xf32>
    %95 = vector.shape_cast %94 : vector<1x1x64xf32> to vector<1x64xf32>
    %96 = vector.broadcast %95 : vector<1x64xf32> to vector<8x64xf32>
    %97 = arith.addf %93, %96 : vector<8x64xf32>
    %cst_48 = arith.constant 5.000000e-01 : f32
    %98 = vector.broadcast %cst_48 : f32 to vector<8x64xf32>
    %99 = arith.mulf %98, %97 : vector<8x64xf32>
    %cst_49 = arith.constant 0.707106769 : f32
    %100 = vector.broadcast %cst_49 : f32 to vector<8x64xf32>
    %101 = arith.mulf %97, %100 : vector<8x64xf32>
    %102 = math.absf %101 : vector<8x64xf32>
    %cst_50 = arith.constant 0.327591091 : f32
    %103 = vector.broadcast %cst_50 : f32 to vector<8x64xf32>
    %104 = arith.mulf %103, %102 : vector<8x64xf32>
    %cst_51 = arith.constant 1.000000e+00 : f32
    %105 = vector.broadcast %cst_51 : f32 to vector<8x64xf32>
    %106 = arith.addf %105, %104 : vector<8x64xf32>
    %cst_52 = arith.constant 1.000000e+00 : f32
    %107 = vector.broadcast %cst_52 : f32 to vector<8x64xf32>
    %108 = arith.divf %107, %106 : vector<8x64xf32>
    %cst_53 = arith.constant 1.06140542 : f32
    %109 = vector.broadcast %cst_53 : f32 to vector<8x64xf32>
    %110 = arith.mulf %109, %108 : vector<8x64xf32>
    %cst_54 = arith.constant -1.45315206 : f32
    %111 = vector.broadcast %cst_54 : f32 to vector<8x64xf32>
    %112 = arith.addf %110, %111 : vector<8x64xf32>
    %113 = arith.mulf %112, %108 : vector<8x64xf32>
    %cst_55 = arith.constant 1.42141378 : f32
    %114 = vector.broadcast %cst_55 : f32 to vector<8x64xf32>
    %115 = arith.addf %113, %114 : vector<8x64xf32>
    %116 = arith.mulf %115, %108 : vector<8x64xf32>
    %cst_56 = arith.constant -0.284496725 : f32
    %117 = vector.broadcast %cst_56 : f32 to vector<8x64xf32>
    %118 = arith.addf %116, %117 : vector<8x64xf32>
    %119 = arith.mulf %118, %108 : vector<8x64xf32>
    %cst_57 = arith.constant 0.254829586 : f32
    %120 = vector.broadcast %cst_57 : f32 to vector<8x64xf32>
    %121 = arith.addf %119, %120 : vector<8x64xf32>
    %122 = arith.mulf %121, %108 : vector<8x64xf32>
    %cst_58 = arith.constant 0.000000e+00 : f32
    %123 = vector.broadcast %cst_58 : f32 to vector<8x64xf32>
    %124 = arith.subf %123, %102 : vector<8x64xf32>
    %125 = arith.mulf %124, %102 : vector<8x64xf32>
    %126 = math.exp %125 : vector<8x64xf32>
    %127 = arith.mulf %122, %126 : vector<8x64xf32>
    %cst_59 = arith.constant 1.000000e+00 : f32
    %128 = vector.broadcast %cst_59 : f32 to vector<8x64xf32>
    %129 = arith.subf %128, %127 : vector<8x64xf32>
    %cst_60 = arith.constant 0.000000e+00 : f32
    %130 = vector.broadcast %cst_60 : f32 to vector<8x64xf32>
    %131 = arith.cmpf olt, %101, %130 : vector<8x64xf32>
    %cst_61 = arith.constant 0.000000e+00 : f32
    %132 = vector.broadcast %cst_61 : f32 to vector<8x64xf32>
    %133 = arith.subf %132, %129 : vector<8x64xf32>
    %134 = arith.select %131, %133, %129 : vector<8x64xi1>, vector<8x64xf32>
    %cst_62 = arith.constant 1.000000e+00 : f32
    %135 = vector.broadcast %cst_62 : f32 to vector<8x64xf32>
    %136 = arith.addf %135, %134 : vector<8x64xf32>
    %137 = arith.mulf %99, %136 : vector<8x64xf32>
    %138 = arith.truncf %137 : vector<8x64xf32> to vector<8x64xbf16>
    %c0_63 = arith.constant 0 : index
    %c0_64 = arith.constant 0 : index
    %c0_65 = arith.constant 0 : index
    %139 = vector.load %arg14[%c0_63, %c0_64, %c0_65] : memref<1x64x32xbf16, #tpu.memory_space<vmem>>, vector<1x64x32xbf16>
    %140 = vector.shape_cast %139 : vector<1x64x32xbf16> to vector<64x32xbf16>
    %cst_66 = arith.constant dense<0.000000e+00> : vector<8x32xf32>
    %141 = tpu.matmul %138, %140, %cst_66 {dimension_numbers = #tpu.dot_dimension_numbers<[1], [0], [0], [1], [0, 0, 1, 1], [], []>} : vector<8x64xbf16>, vector<64x32xbf16>, vector<8x32xf32> -> vector<8x32xf32>
    %c0_67 = arith.constant 0 : index
    %c0_68 = arith.constant 0 : index
    %c0_69 = arith.constant 0 : index
    %142 = vector.load %arg15[%c0_67, %c0_68, %c0_69] : memref<1x1x32xf32, #tpu.memory_space<vmem>>, vector<1x1x32xf32>
    %143 = vector.shape_cast %142 : vector<1x1x32xf32> to vector<1x32xf32>
    %144 = vector.broadcast %143 : vector<1x32xf32> to vector<8x32xf32>
    %145 = arith.addf %141, %144 : vector<8x32xf32>
    %146 = arith.addf %89, %145 : vector<8x32xf32>
    %c0_70 = arith.constant 0 : index
    %c0_71 = arith.constant 0 : index
    %c0_72 = arith.constant 0 : index
    %147 = vector.load %arg16[%c0_70, %c0_71, %c0_72] : memref<1x1x32xf32, #tpu.memory_space<vmem>>, vector<1x1x32xf32>
    %148 = vector.shape_cast %147 : vector<1x1x32xf32> to vector<1x32xf32>
    %c0_73 = arith.constant 0 : index
    %c0_74 = arith.constant 0 : index
    %c0_75 = arith.constant 0 : index
    %149 = vector.load %arg17[%c0_73, %c0_74, %c0_75] : memref<1x1x32xf32, #tpu.memory_space<vmem>>, vector<1x1x32xf32>
    %150 = vector.shape_cast %149 : vector<1x1x32xf32> to vector<1x32xf32>
    %cst_76 = arith.constant dense<0.000000e+00> : vector<8xf32>
    %151 = vector.multi_reduction <add>, %146, %cst_76 [1] : vector<8x32xf32> to vector<8xf32>
    %152 = vector.shape_cast %151 : vector<8xf32> to vector<8x1xf32>
    %cst_77 = arith.constant 3.200000e+01 : f32
    %153 = vector.broadcast %cst_77 : f32 to vector<8x1xf32>
    %154 = arith.divf %152, %153 : vector<8x1xf32>
    %155 = vector.broadcast %154 : vector<8x1xf32> to vector<8x32xf32>
    %156 = arith.subf %146, %155 : vector<8x32xf32>
    %157 = arith.mulf %156, %156 : vector<8x32xf32>
    %cst_78 = arith.constant dense<0.000000e+00> : vector<8xf32>
    %158 = vector.multi_reduction <add>, %157, %cst_78 [1] : vector<8x32xf32> to vector<8xf32>
    %159 = vector.shape_cast %158 : vector<8xf32> to vector<8x1xf32>
    %cst_79 = arith.constant 3.200000e+01 : f32
    %160 = vector.broadcast %cst_79 : f32 to vector<8x1xf32>
    %161 = arith.divf %159, %160 : vector<8x1xf32>
    %162 = vector.broadcast %154 : vector<8x1xf32> to vector<8x32xf32>
    %163 = arith.subf %146, %162 : vector<8x32xf32>
    %cst_80 = arith.constant 9.99999974E-6 : f32
    %164 = vector.broadcast %cst_80 : f32 to vector<8x1xf32>
    %165 = arith.addf %161, %164 : vector<8x1xf32>
    %166 = math.rsqrt %165 : vector<8x1xf32>
    %167 = vector.broadcast %166 : vector<8x1xf32> to vector<8x32xf32>
    %168 = arith.mulf %163, %167 : vector<8x32xf32>
    %169 = vector.broadcast %148 : vector<1x32xf32> to vector<8x32xf32>
    %170 = arith.mulf %168, %169 : vector<8x32xf32>
    %171 = vector.broadcast %150 : vector<1x32xf32> to vector<8x32xf32>
    %172 = arith.addf %170, %171 : vector<8x32xf32>
    %c0_81 = arith.constant 0 : index
    %c0_82 = arith.constant 0 : index
    %173 = vector.load %arg19[%c0_81, %c0_82] : memref<8x32xf32, #tpu.memory_space<vmem>>, vector<8x32xf32>
    tpu.vector_store %arg19[%c0_81, %c0_82], %172 {strides = array<i32>} : memref<8x32xf32, #tpu.memory_space<vmem>>, vector<8x32xf32>,
    %c1_i32 = arith.constant 1 : i32
    %174 = arith.cmpi eq, %arg1, %c1_i32 : i32
    %175 = arith.extui %174 : i1 to i32
    %c0_i32_83 = arith.constant 0 : i32
    %176 = arith.cmpi ne, %175, %c0_i32_83 : i32
    scf.if %176 {
      %c0_84 = arith.constant 0 : index
      %c0_85 = arith.constant 0 : index
      %177 = vector.load %arg18[%c0_84, %c0_85] : memref<8x32xf32, #tpu.memory_space<vmem>>, vector<8x32xf32>
      tpu.vector_store %arg18[%c0_84, %c0_85], %172 {strides = array<i32>} : memref<8x32xf32, #tpu.memory_space<vmem>>, vector<8x32xf32>,
    } else {
    }
    return
  }
  func.func @transform_0(%arg0: i32, %arg1: i32) -> (i32, i32) {
    %c0_i32 = arith.constant 0 : i32
    %c0_i32_0 = arith.constant 0 : i32
    return %arg0, %c0_i32 : i32, i32
  }
  func.func @transform_1(%arg0: i32, %arg1: i32) -> (i32, i32, i32) {
    %c0_i32 = arith.constant 0 : i32
    %c0_i32_0 = arith.constant 0 : i32
    %c0_i32_1 = arith.constant 0 : i32
    return %arg0, %c0_i32, %c0_i32_0 : i32, i32, i32
  }
  func.func @transform_2(%arg0: i32, %arg1: i32) -> (i32, i32) {
    %c0_i32 = arith.constant 0 : i32
    %c0_i32_0 = arith.constant 0 : i32
    %c0_i32_1 = arith.constant 0 : i32
    return %c0_i32, %c0_i32_0 : i32, i32
  }
  func.func @transform_3(%arg0: i32, %arg1: i32) -> (i32, i32) {
    %c0_i32 = arith.constant 0 : i32
    %c0_i32_0 = arith.constant 0 : i32
    %c0_i32_1 = arith.constant 0 : i32
    return %c0_i32, %c0_i32_0 : i32, i32
  }
  func.func @transform_4(%arg0: i32, %arg1: i32) -> (i32, i32, i32) {
    %c0_i32 = arith.constant 0 : i32
    %c0_i32_0 = arith.constant 0 : i32
    %c0_i32_1 = arith.constant 0 : i32
    return %arg1, %c0_i32, %c0_i32_0 : i32, i32, i32
  }
  func.func @transform_5(%arg0: i32, %arg1: i32) -> (i32, i32, i32) {
    %c0_i32 = arith.constant 0 : i32
    %c0_i32_0 = arith.constant 0 : i32
    %c0_i32_1 = arith.constant 0 : i32
    return %arg1, %c0_i32, %c0_i32_0 : i32, i32, i32
  }
  func.func @transform_6(%arg0: i32, %arg1: i32) -> (i32, i32, i32) {
    %c0_i32 = arith.constant 0 : i32
    %c0_i32_0 = arith.constant 0 : i32
    %c0_i32_1 = arith.constant 0 : i32
    return %arg1, %c0_i32, %c0_i32_0 : i32, i32, i32
  }
  func.func @transform_7(%arg0: i32, %arg1: i32) -> (i32, i32, i32) {
    %c0_i32 = arith.constant 0 : i32
    %c0_i32_0 = arith.constant 0 : i32
    %c0_i32_1 = arith.constant 0 : i32
    return %arg1, %c0_i32, %c0_i32_0 : i32, i32, i32
  }
  func.func @transform_8(%arg0: i32, %arg1: i32) -> (i32, i32, i32) {
    %c0_i32 = arith.constant 0 : i32
    %c0_i32_0 = arith.constant 0 : i32
    %c0_i32_1 = arith.constant 0 : i32
    return %arg1, %c0_i32, %c0_i32_0 : i32, i32, i32
  }
  func.func @transform_9(%arg0: i32, %arg1: i32) -> (i32, i32, i32) {
    %c0_i32 = arith.constant 0 : i32
    %c0_i32_0 = arith.constant 0 : i32
    %c0_i32_1 = arith.constant 0 : i32
    return %arg1, %c0_i32, %c0_i32_0 : i32, i32, i32
  }
  func.func @transform_10(%arg0: i32, %arg1: i32) -> (i32, i32, i32) {
    %c0_i32 = arith.constant 0 : i32
    %c0_i32_0 = arith.constant 0 : i32
    %c0_i32_1 = arith.constant 0 : i32
    return %arg1, %c0_i32, %c0_i32_0 : i32, i32, i32
  }
  func.func @transform_11(%arg0: i32, %arg1: i32) -> (i32, i32, i32) {
    %c0_i32 = arith.constant 0 : i32
    %c0_i32_0 = arith.constant 0 : i32
    %c0_i32_1 = arith.constant 0 : i32
    return %arg1, %c0_i32, %c0_i32_0 : i32, i32, i32
  }
  func.func @transform_12(%arg0: i32, %arg1: i32) -> (i32, i32, i32) {
    %c0_i32 = arith.constant 0 : i32
    %c0_i32_0 = arith.constant 0 : i32
    %c0_i32_1 = arith.constant 0 : i32
    return %arg1, %c0_i32, %c0_i32_0 : i32, i32, i32
  }
  func.func @transform_13(%arg0: i32, %arg1: i32) -> (i32, i32, i32) {
    %c0_i32 = arith.constant 0 : i32
    %c0_i32_0 = arith.constant 0 : i32
    %c0_i32_1 = arith.constant 0 : i32
    return %arg1, %c0_i32, %c0_i32_0 : i32, i32, i32
  }
  func.func @transform_14(%arg0: i32, %arg1: i32) -> (i32, i32, i32) {
    %c0_i32 = arith.constant 0 : i32
    %c0_i32_0 = arith.constant 0 : i32
    %c0_i32_1 = arith.constant 0 : i32
    return %arg1, %c0_i32, %c0_i32_0 : i32, i32, i32
  }
  func.func @transform_15(%arg0: i32, %arg1: i32) -> (i32, i32, i32) {
    %c0_i32 = arith.constant 0 : i32
    %c0_i32_0 = arith.constant 0 : i32
    %c0_i32_1 = arith.constant 0 : i32
    return %arg1, %c0_i32, %c0_i32_0 : i32, i32, i32
  }
  func.func @transform_16(%arg0: i32, %arg1: i32) -> (i32, i32) {
    %c0_i32 = arith.constant 0 : i32
    %c0_i32_0 = arith.constant 0 : i32
    return %arg0, %c0_i32 : i32, i32
  }
}

</mosaic_0001>

<bundles_post_ra>
// kernel: multitask_forward.3
= control target key start
LH: loop header
LB: loop body
LE: loop exit
PB: predicated region body
PF: predicated region fallthrough
CT: control target
= control target key end

     0   :  { %v235_v1 = vmov 0.0   ;;  %vm236_vm0 = vmmov 0   ;;  %s294_s0 = inlined_call_operand.vmem [shape: f32[2,32], index: 0, kind: input, shape index: {}]   ;;  %s295_s1 = inlined_call_operand.vmem [shape: bf16[32,32], index: 1, kind: input, shape index: {}]   ;;  %s296_s2 = inlined_call_operand.vmem [shape: f32[1,32], index: 2, kind: input, shape index: {}]   ;;  %s297_s3 = inlined_call_operand.vmem [shape: bf16[32,128], index: 3, kind: input, shape index: {}]   ;;  %s298_s4 = inlined_call_operand.vmem [shape: f32[1,128], index: 4, kind: input, shape index: {}]   ;;  %s299_s5 = inlined_call_operand.hbm [shape: f32[2,128], index: 5, kind: output, shape index: {}]  }
   0x1   :  { %v207_v0 = vld [vmem:[%s295_s1 + $0x8] sm:$0xff]   ;;  %188 = vmatprep.subr.bf16.mxu0 %v235_v1  ;;  %196 = vmatprep.subr.bf16.mxu1 %v235_v1  ;;  %v208_v2 = vld [vmem:[%s295_s1] sm:$0xff]  }
   0x2   :  { %189 = vmatpush3.bf16.msra.mxu0 %v207_v0  ;;  %192 = vmatprep.mubr.msk.bf16.mxu0 %vm236_vm0, %v235_v1  ;;  %v22_v3 = vld [vmem:[%s294_s0] sm:$0x3] }
   0x3   :  { %190 = vmatprep.subr.bf16.mxu0 %v235_v1  ;;  %200 = vmatprep.mubr.msk.bf16.mxu1 %vm236_vm0, %v235_v1 }
   0x4   :  { %10 = vsyncpa [#allocation3], 0  ;;  %v23_v4 = vpack.c.bf16 %v22_v3, %v22_v3  ;;  %vm47_vm1 = vcmask 261120   ;;  %v209_v5 = vld [vmem:[%s297_s3 + $0x8] sm:$0xff]   ;;  %v210_v6 = vld [vmem:[%s297_s3] sm:$0xff]   ;;  %s237_s3 = smov [#allocation2]  }
   0x5   :  { %197 = vmatpush3.bf16.msra.mxu1 %v209_v5  ;;  %v174_v7 = vld [vmem:[%s296_s2] ss:$0 sm:$0xff]  ;;  %s166_s30 = sshll.u32 %s237_s3, 4  ;;  %s167_s30 = int_to_ptr.vmem [resolvable:$true] %s166_s30 }
   0x6   :  { %191 = vmatpush3.bf16.msra.mxu0 %v208_v2  ;;  %198 = vmatprep.subr.bf16.mxu1 %v235_v1  ;;  %v178_v15 = vld [vmem:[%s298_s4] ss:$0 sm:$0xff]  ;;  %s213_s2 = scalar_lea.vmem %s167_s30, 32  ;;  %p218_p1 = scmp.lt.s32.totalorder %s167_s30, %s167_s30 }
   0x7   :  { %p214_p0 = scmp.ne.s32.totalorder %s167_s30, %s213_s2  ;;  %p219_p2 = scmp.lt.s32.totalorder %s213_s2, %s213_s2 }
   0x9   :  { %193 = vmatmul.mubr.msk.bf16.vlgmr.msra.gmra.mxu0 %vm47_vm1, %v23_v4  ;;  %199 = vmatpush3.bf16.msra.mxu1 %v210_v6  ;;  %p220_p3 = por %p219_p2, %p218_p1 }
   0xb   :  { %p221_p4 = pnand %p220_p3, %p214_p0 }
  0xc9   :  { %v85_v8 = vpop.f32.mrf.mxu0 }
  0xca   :  { %v86_v9 = vadd.f32 %v174_v7, %v85_v8 }
  0xcb   :  { %v194_v10 = vpop.f32.mrf.mxu0 }
  0xcc   :  { %211 = vtanh.f32 %v86_v9 }
  0xcd   :  { %v88_v11 = vpop.f32.mrf.mxu0 }
  0xcf   :  { %v195_v12 = vpop.f32.mrf.mxu0 }
  0xd9   :  { %v212_v13 = vpop.eup %211 }
  0xda   :  { %v92_v14 = vpack.c.bf16 %v212_v13, %v212_v13 }
  0xdc   :  { %201 = vmatmul.mubr.msk.bf16.vlgmr.msra.gmra.mxu1 %vm47_vm1, %v92_v14 }
 0x19c   :  { %v153_v16 = vpop.f32.mrf.mxu1 }
 0x19d   :  { %v154_v17 = vadd.f32 %v178_v15, %v153_v16 }
 0x19e   :  { %v202_v18 = vpop.f32.mrf.mxu1 }
 0x19f   :  { %159 = vst [vmem:[#allocation2] sm:$0x3] %v154_v17 }
 0x1a0   :  { %v156_v19 = vpop.f32.mrf.mxu1 }
 0x1a1   :  { %224 = shalt.err (!%p221_p4)
}
 0x1a2   :  { %169 = dma.vmem_to_hbm [thread:$0]  %s167_s30, 32, %s299_s5, [#allocation3]   ;;  %v203_v20 = vpop.f32.mrf.mxu1 }
 0x1a3   :  { %233 = dma.done.wait [#allocation3], 32  }
 0x1a4   :  { %234 = vsyncadd [#allocation3], 4294967264 }
 0x1a5   :  { %173 = vsyncpa [#allocation3], 1 }

// kernel: multitask_forward.2
= control target key start
LH: loop header
LB: loop body
LE: loop exit
PB: predicated region body
PF: predicated region fallthrough
CT: control target
= control target key end

     0   :  { %s2035_s21 = smov 0   ;;  %s2037_s22 = smov 0   ;;  %s2285_s0 = inlined_call_operand.vmem [shape: f32[16,32], index: 0, kind: input, shape index: {}]   ;;  %s2286_s1 = inlined_call_operand.vmem [shape: f32[2,1,8], index: 1, kind: input, shape index: {}]   ;;  %s2287_s2 = inlined_call_operand.vmem [shape: f32[1,32], index: 2, kind: input, shape index: {}]   ;;  %s2288_s3 = inlined_call_operand.vmem [shape: f32[1,32], index: 3, kind: input, shape index: {}]   ;;  %s2289_s4 = inlined_call_operand.vmem [shape: bf16[2,32,96], index: 4, kind: input, shape index: {}]   ;;  %s2290_s5 = inlined_call_operand.vmem [shape: f32[2,1,96], index: 5, kind: input, shape index: {}]   ;;  %s2291_s6 = inlined_call_operand.vmem [shape: bf16[2,32,32], index: 6, kind: input, shape index: {}]   ;;  %s2292_s7 = inlined_call_operand.vmem [shape: f32[2,1,32], index: 7, kind: input, shape index: {}]   ;;  %s2293_s8 = inlined_call_operand.vmem [shape: f32[2,1,32], index: 8, kind: input, shape index: {}]   ;;  %s2294_s9 = inlined_call_operand.vmem [shape: f32[2,1,32], index: 9, kind: input, shape index: {}]   ;;  %s2295_s10 = inlined_call_operand.vmem [shape: bf16[2,32,64], index: 10, kind: input, shape index: {}]   ;;  %s2296_s11 = inlined_call_operand.vmem [shape: f32[2,1,64], index: 11, kind: input, shape index: {}]   ;;  %s2297_s12 = inlined_call_operand.vmem [shape: bf16[2,64,32], index: 12, kind: input, shape index: {}]   ;;  %s2298_s13 = inlined_call_operand.vmem [shape: f32[2,1,32], index: 13, kind: input, shape index: {}]   ;;  %s2299_s14 = inlined_call_operand.vmem [shape: f32[2,1,32], index: 14, kind: input, shape index: {}]   ;;  %s2300_s15 = inlined_call_operand.vmem [shape: f32[2,1,32], index: 15, kind: input, shape index: {}]   ;;  %s2301_s16 = inlined_call_operand.vmem [shape: f32[16,32], index: 16, kind: output, shape index: {}]  }
   0x1   :  { %2307 = sst [smem:[#allocation10_spill]] %s2285_s0  ;;  %s2039_s23 = smov 0  }
   0x2   :  { %2308 = sst [smem:[#allocation11_spill]] %s2286_s1  ;;  %s2041_s24 = smov 0  }
   0x3   :  { %2309 = sst [smem:[#allocation12_spill]] %s2287_s2  ;;  %s2043_s25 = smov 0  }
   0x4   :  { %2310 = sst [smem:[#allocation13_spill]] %s2288_s3 }
   0x5   :  { %2311 = sst [smem:[#allocation14_spill]] %s2289_s4 }
   0x6   :  { %2312 = sst [smem:[#allocation15_spill]] %s2291_s6 }
   0x7   :  { %2313 = sst [smem:[#allocation16_spill]] %s2295_s10 }
   0x8   :  { %2314 = sst [smem:[#allocation17_spill]] %s2296_s11 }
   0x9   :  { %2315 = sst [smem:[#allocation18_spill]] %s2300_s15 }
   0xa   :  { %2316 = sst [smem:[#allocation19_spill]] %s2301_s16 }
   0xb LB: > { %2317 = sst [smem:[#allocation3_spill]] %s1924_s21  ;;  %s35_s26 = sadd.s32 1, %s1932_s23  ;;  %s1940_s25 = sphi %s2043_s25, %s26_s25   ;;  %s1936_s24 = sphi %s2041_s24, %s2350_s24   ;;  %s1932_s23 = sphi %s2039_s23, %s2349_s23   ;;  %s1928_s22 = sphi %s2037_s22, %s2348_s22   ;;  %s1924_s21 = sphi %s2035_s21, %s2347_s21  }
   0xc   : > { %2318 = sst [smem:[#allocation4_spill]] %s1932_s23  ;;  %s38_s27 = sadd.s32 1, %s1936_s24 }
   0xd   : > { %2319 = sst [smem:[#allocation5_spill]] %s1936_s24  ;;  %p36_p0 = scmp.ge.s32.totalorder %s35_s26, 2 }
   0xe   : > { %2320 = sst [smem:[#allocation6_spill]] %s1940_s25  ;;  %p1698_p1 = scmp.ge.s32.totalorder %s1940_s25, 1 }
   0xf   : > { %p585_p2 = scmp.lt.s32.totalorder %s1940_s25, 5  ;;  %s2352_s26 = smov (%p36_p0, %s35_s26), 0 }
  0x10   : > { %2321 = sst [smem:[#allocation7_spill]] %s2352_s26  ;;  %s2354_s27 = smov (!%p36_p0, %s38_s27), %s1936_s24 }
  0x11   : > { %p586_p3 = pnand %p1698_p1, %p585_p2  ;;  %p40_p4 = scmp.ge.s32.totalorder %s2354_s27, 2 }
  0x13   : > { %s2356_s27 = smov (%p40_p4, %s2354_s27), 0  ;;  %589 = sbr.rel (%p586_p3) target bundleno = 3277 (0xccd), region = 84 }
  0x14   : > { %2322 = sst [smem:[#allocation8_spill]] %s2356_s27 }
  0x18   : > { %p680_p5 = scmp.lt.s32.totalorder %s1928_s22, 1  ;;  %p687_p6 = scmp.lt.s32.totalorder %s1924_s21, 1 }
  0x19   : > { %s2325_s20 = sld [smem:[#allocation10_spill]] }
  0x1a   : > { %s2358_s22 = smov (!%p680_p5, %s1928_s22), 1  ;;  %s2326_s4 = sld [smem:[#allocation14_spill]] }
  0x1b   : > { %2323 = sst [smem:[#allocation9_spill]] %s2358_s22  ;;  %s1699_s29 = sshll.u32 %s2358_s22, 3 }
  0x1c   : > { %s2071_s28 = scalar_select %p687_p6, %s1924_s21, 1 }
  0x1d   : > { %s2327_s6 = sld [smem:[#allocation15_spill]] }
  0x1e   : > { %s1744_s26 = sshll.u32 %s2071_s28, 4  ;;  %s2328_s10 = sld [smem:[#allocation16_spill]] }
  0x1f   : > { %s683_s27 = scalar_lea.vmem %s2325_s20, %s1699_s29  ;;  %s724_s18 = scalar_lea.vmem %s2298_s13, %s2071_s28 }
  0x20   : > { %s2085_s25 = scalar_lea.vmem %s2326_s4, %s1744_s26  ;;  %s727_s22 = scalar_lea.vmem %s2299_s14, %s2071_s28 }
  0x21   : > { %s2330_s4 = sld [smem:[#allocation18_spill]] }
  0x22   : > { %s2331_s21 = sld [smem:[#allocation19_spill]] }
  0x23   : > { %s2094_s30 = scalar_lea.vmem %s2327_s6, %s1744_s26  ;;  %s1747_s6 = sshll.u32 %s2071_s28, 5 }
  0x24   : > { %s2111_s3 = scalar_lea.vmem %s2328_s10, %s1744_s26  ;;  %s2125_s1 = scalar_lea.vmem %s2297_s12, %s1747_s6 }
  0x25   : > { %s2332_s17 = sld [smem:[#allocation3_spill]] }
  0x27   : > { %s730_s10 = scalar_lea.vmem %s2330_s4, %s2071_s28 }
  0x28   : > { %s2138_s11 = scalar_lea.vmem %s2331_s21, %s1699_s29 }
  0x2b   : > { %p1709_p7 = scmp.ne.s32.totalorder %s2332_s17, 0 }
  0x2c   : > { %s2333_s21 = sld [smem:[#allocation12_spill]] (!%p1709_p7) }
  0x2d   : > { %739 = sbr.rel (%p1709_p7) target bundleno = 360 (0x168), region = 88  ;;  %s2334_s0 = sld [smem:[#allocation13_spill]] (!%p1709_p7) }
  0x32   : > { %v740_v0 = vld [vmem:[%s683_s27] sm:$0xff]  ;;  %vm743_vm0 = vcmask 261120  }
  0x33   : > { %v744_v1 = vsel %vm743_vm0, %v740_v0, 0.0  ;;  %v1710_v11 = vld [vmem:[%s2333_s21] ss:$0 sm:$0xff] }
  0x34   : > { %745 = vadd.xlane.f32.xlu0 %v744_v1  ;;  %v1711_v13 = vld [vmem:[%s2334_s0] ss:$0 sm:$0xff] }
  0xbd   : > { %v746_v2 = vpop.xlane.xlu0 %745 }
  0xbe   : > { %v748_v3 = vmul.f32 0.03125, %v746_v2 }
  0xc0   : > { %v749_v4 = vsub.f32 %v740_v0, %v748_v3 }
  0xc2   : > { %v750_v5 = vmul.f32 %v749_v4, %v749_v4 }
  0xc4   : > { %v751_v6 = vsel %vm743_vm0, %v750_v5, 0.0 }
  0xc5   : > { %752 = vadd.xlane.f32.xlu0 %v751_v6 }
 0x14e   : > { %v753_v7 = vpop.xlane.xlu0 %752 }
 0x14f   : > { %v754_v8 = vmul.f32 0.03125, %v753_v7 }
 0x151   : > { %v755_v9 = vadd.f32 1e-05, %v754_v8 }
 0x153   : > { %1874 = vrsqrt.f32 %v755_v9 }
 0x160   : > { %v1875_v10 = vpop.eup %1874 }
 0x161   : > { %v757_v12 = vmul.f32 %v1875_v10, %v749_v4 }
 0x163   : > { %v764_v14 = vmul.f32 %v1710_v11, %v757_v12 }
 0x165   : > { %v771_v15 = vadd.f32 %v1711_v13, %v764_v14 }
 0x167   : > { %772 = vst.msk [vmem:[#allocation2] sm:$0xff] %vm743_vm0, %v771_v15 }
 0x168 PF: > { %v1876_v16 = vld [vmem:[%s2085_s25 + $0x8] sm:$0xff]   ;;  %v1942_v17 = vmov 0.0   ;;  %v1877_v18 = vld [vmem:[%s2085_s25] sm:$0xff]   ;;  %vm1943_vm1 = vmmov 0   ;;  %vm798_vm2 = vcmask 261120   ;;  %s2335_s20 = scalar_lea.vmem %s2290_s5, %s2071_s28  ;;  %s1944_s23 = smov 64  }
 0x169   : > { %1770 = vmatprep.subr.bf16.mxu0 %v1942_v17  ;;  %1783 = vmatprep.subr.mxu1 %v1942_v17  ;;  %v1712_v21 = vld [vmem:[%s2335_s20] ss:$0 sm:$0xff]  ;;  %s1945_s24 = smov 96   ;;  %s2336_s26 = sld [smem:[#allocation9_spill]]  ;;  %vm846_vm3 = vcmask 130048   ;;  %vm929_vm4 = vcmask 64512  }
 0x16a   : > { %1771 = vmatpush3.bf16.msra.mxu0 %v1876_v16  ;;  %1774 = vmatprep.mubr.msk.bf16.mxu0 %vm1943_vm1, %v1942_v17  ;;  %s1946_s2 = smov 80   ;;  %s2337_s17 = sld [smem:[#allocation11_spill]]  ;;  %v1878_v61 = vld [vmem:[%s2094_s30 + $0x8] sm:$0xff]   ;;  %v1879_v62 = vld [vmem:[%s2094_s30] sm:$0xff]   ;;  %vm1421_vm6 = vcmask 523264  }
 0x16b   : > { %1772 = vmatprep.subr.bf16.mxu0 %v1942_v17  ;;  %1785 = vmatprep.mubr.msk.f32.mxu1 %vm1943_vm1, %v1942_v17  ;;  %s1947_s6 = smov 112   ;;  %s1948_s21 = smov 48  }
 0x16c   : > { %s1949_s27 = smov 16   ;;  %s2339_s30 = scalar_lea.vmem %s2292_s7, %s2071_s28 }
 0x16d   : > { %v1723_v4 = vld [vmem:[%s2339_s30] ss:$0 sm:$0xff]  ;;  %s2340_s20 = scalar_lea.vmem %s2293_s8, %s2071_s28  ;;  %s2342_s15 = sld [smem:[#allocation17_spill]] }
 0x16e   : > { %v2156_v19 = vld [vmem:[#allocation2] sm:$0xff]  ;;  %1773 = vmatpush3.bf16.msra.mxu0 %v1877_v18  ;;  %v1880_v18 = vld [vmem:[%s2111_s3 + $0x8] sm:$0xff]   ;;  %s2345_s29 = sld [smem:[#allocation3_spill]] }
 0x16f   : > { %v774_v20 = vpack.c.bf16 %v2156_v19, %v2156_v19  ;;  %1778 = vmatprep.subr.mxu0 %v1942_v17 }
 0x170   : > { %s2338_s4 = scalar_lea.vmem %s2337_s17, %s2336_s26 }
 0x171   : > { %1775 = vmatmul.mubr.msk.bf16.vlgmr.msra.gmra.mxu0 %vm798_vm2, %v774_v20  ;;  %v1718_v30 = vld [vmem:[%s2338_s4] ss:$0 sm:$0xff] }
 0x172   : > { %1780 = vmatprep.mubr.msk.f32.mxu0 %vm1943_vm1, %v1942_v17  ;;  %v1881_v20 = vld [vmem:[%s2111_s3] sm:$0xff]   ;;  %s2341_s3 = scalar_lea.vmem %s2294_s9, %s2071_s28 }
 0x173   : > { %s2343_s16 = scalar_lea.vmem %s2342_s15, %s2071_s28 }
 0x174   : > { %p1741_p8 = scmp.ne.s32.totalorder %s2345_s29, 1 }
 0x231   : > { %v836_v22 = vpop.f32.mrf.mxu0 }
 0x232   : > { %v2172_v23 = vadd.f32 %v1712_v21, %v836_v22 }
 0x233   : > { %v1776_v24 = vpop.f32.mrf.mxu0 }
 0x234   : > { %941 = vrot.lane.b32.xlu1 %v2172_v23, %s1944_s23  ;;  %844 = vrot.lane.b32.xlu0 %v2172_v23, %s1945_s24  ;;  %v1727_v24 = vld [vmem:[%s2340_s20] ss:$0 sm:$0xff] }
 0x235   : > { %v839_v25 = vpop.f32.mrf.mxu0 }
 0x237   : > { %v1777_v26 = vpop.f32.mrf.mxu0 }
 0x238   : > { %1019 = vrot.lane.b32.xlu1 %v2172_v23, %s1946_s2  ;;  %v1728_v26 = vld [vmem:[%s2341_s3] ss:$0 sm:$0xff] }
 0x2a6   : > { %v942_v27 = vpop.permute.xlu1 %941  ;;  %v845_v28 = vpop.permute.xlu0 %844 }
 0x2a7   : > { %1779 = vmatpush3.xpose.msk.msra.mxu0 %vm846_vm3, %v845_v28  ;;  %1784 = vmatpush3.msra.mxu1 %v942_v27 }
 0x2a8   : > { %1788 = vmatprep.subr.mxu1 %v1942_v17  ;;  %1793 = vmatprep.subr.mxu0 %v1942_v17 }
 0x2aa   : > { %1781 = vmatmul.mubr.msk.f32.vlgmr.msra.gmra.mxu0 %vm846_vm3, %v2172_v23  ;;  %v1020_v40 = vpop.permute.xlu1 %1019 }
 0x2ab   : > { %1795 = vmatprep.mubr.msk.f32.mxu0 %vm1943_vm1, %v1942_v17 }
 0x36a   : > { %v917_v29 = vpop.f32.mrf.mxu0 }
 0x36b   : > { %v921_v31 = vmul.f32 0.25, %v917_v29 }
 0x36c   : > { %v1782_v32 = vpop.f32.mrf.mxu0 }
 0x36d   : > { %v928_v33 = vadd.f32 %v1718_v30, %v921_v31  ;;  %v1883_v31 = vld [vmem:[%s2125_s1 + $0x10] sm:$0xff]   ;;  %v1884_v32 = vld [vmem:[%s2125_s1 + $0x8] sm:$0xff]  }
 0x36f   : > { %v930_v34 = vsel %vm929_vm4, %v928_v33, -inf }
 0x370   : > { %931 = vmax.xlane.f32.xlu0 %v930_v34  ;;  %v1729_v34 = vld [vmem:[%s2343_s16] ss:$0 sm:$0xff] }
 0x3f9   : > { %v932_v35 = vpop.xlane.xlu0 %931 }
 0x3fa   : > { %v933_v36 = vsub.f32 %v928_v33, %v932_v35  ;;  %v1885_v33 = vld [vmem:[%s2125_s1] sm:$0xff]  }
 0x3fc   : > { %v934_v37 = vmul.f32 1.442695, %v933_v36 }
 0x3fe   : > { %1886 = vpow2.f32 %v934_v37 }
 0x40b   : > { %v1887_v38 = vpop.eup %1886 }
 0x40c   : > { %v936_v39 = vsel %vm929_vm4, %v1887_v38, 0.0 }
 0x40d   : > { %937 = vadd.xlane.f32.xlu1 %v936_v39 }
 0x41e   : > { %1017 = vrot.lane.b32.xlu1 %v2172_v23, %s1947_s6 }
 0x496   : > { %v938_v41 = vpop.xlane.xlu1 %937 }
 0x497   : > { %1888 = vrcp.f32 %v938_v41 }
 0x49a   : > { %v1018_v44 = vpop.permute.xlu1 %1017 }
 0x4a4   : > { %v1889_v42 = vpop.eup %1888 }
 0x4a5   : > { %v940_v43 = vmul.f32 %v1889_v42, %v1887_v38 }
 0x4a7   : > { %1786 = vmatmul.mubr.msk.f32.vlgmr.msra.gmra.mxu1 %vm929_vm4, %v940_v43 }
 0x4a8   : > { %1789 = vmatpush3.xpose.msk.msra.mxu1 %vm846_vm3, %v1020_v40  ;;  %1790 = vmatprep.mubr.msk.f32.mxu1 %vm1943_vm1, %v1942_v17 }
 0x4a9   : > { %1798 = vmatprep.subr.bf16.mxu1 %v1942_v17 }
 0x4ab   : > { %1791 = vmatmul.mubr.msk.f32.vlgmr.msra.gmra.mxu1 %vm846_vm3, %v1018_v44 }
 0x4ac   : > { %1802 = vmatprep.mubr.msk.bf16.mxu1 %vm1943_vm1, %v1942_v17  ;;  %1799 = vmatpush3.bf16.msra.mxu1 %v1878_v61 }
 0x4ad   : > { %1800 = vmatprep.subr.bf16.mxu1 %v1942_v17 }
 0x4b0   : > { %1801 = vmatpush3.bf16.msra.mxu1 %v1879_v62 }
 0x4b1   : > { %1814 = vmatprep.subr.bf16.mxu1 %v1942_v17 }
 0x567   : > { %v1013_v45 = vpop.f32.mrf.mxu1 }
 0x569   : > { %v1787_v46 = vpop.f32.mrf.mxu1 }
 0x56b   : > { %v1091_v47 = vpop.f32.mrf.mxu1 }
 0x56c   : > { %v1095_v48 = vmul.f32 0.25, %v1091_v47 }
 0x56d   : > { %v1792_v49 = vpop.f32.mrf.mxu1 }
 0x56e   : > { %v1096_v50 = vadd.f32 %v1718_v30, %v1095_v48  ;;  %v1882_v30 = vld [vmem:[%s2125_s1 + $0x18] sm:$0xff]  }
 0x570   : > { %v1097_v51 = vsel %vm929_vm4, %v1096_v50, -inf }
 0x571   : > { %1098 = vmax.xlane.f32.xlu1 %v1097_v51 }
 0x5fa   : > { %v1099_v52 = vpop.xlane.xlu1 %1098 }
 0x5fb   : > { %v1100_v53 = vsub.f32 %v1096_v50, %v1099_v52 }
 0x5fd   : > { %v1101_v54 = vmul.f32 1.442695, %v1100_v53 }
 0x5ff   : > { %1890 = vpow2.f32 %v1101_v54 }
 0x60c   : > { %v1891_v55 = vpop.eup %1890 }
 0x60d   : > { %v1103_v56 = vsel %vm929_vm4, %v1891_v55, 0.0 }
 0x60e   : > { %1104 = vadd.xlane.f32.xlu0 %v1103_v56 }
 0x624   : > { %1108 = vrot.lane.b32.xlu0 %v2172_v23, %s1948_s21 }
 0x697   : > { %v1105_v57 = vpop.xlane.xlu0 %1104 }
 0x698   : > { %1892 = vrcp.f32 %v1105_v57 }
 0x69b   : > { %v1109_v58 = vpop.permute.xlu0 %1108 }
 0x69c   : > { %1794 = vmatpush3.msra.mxu0 %v1109_v58 }
 0x69d   : > { %1806 = vmatprep.subr.bf16.mxu0 %v1942_v17 }
 0x6a5   : > { %v1893_v59 = vpop.eup %1892 }
 0x6a6   : > { %v1107_v60 = vmul.f32 %v1893_v59, %v1891_v55 }
 0x6a8   : > { %1796 = vmatmul.mubr.msk.f32.vlgmr.msra.gmra.mxu0 %vm929_vm4, %v1107_v60 }
 0x6a9   : > { %1810 = vmatprep.mubr.msk.bf16.mxu0 %vm1943_vm1, %v1942_v17  ;;  %1807 = vmatpush3.bf16.msra.mxu0 %v1880_v18 }
 0x6aa   : > { %1808 = vmatprep.subr.bf16.mxu0 %v1942_v17 }
 0x6ad   : > { %1809 = vmatpush3.bf16.msra.mxu0 %v1881_v20  ;;  %v1739_v20 = vld [vmem:[%s727_s22] ss:$0 sm:$0xff] }
 0x768   : > { %v1180_v63 = vpop.f32.mrf.mxu0 }
 0x769   : > { %1185 = vrot.lane.b32.xlu0 %v1180_v63, %s1949_s27 }
 0x76a   : > { %v1797_v0 = vpop.f32.mrf.mxu0 }
 0x7db   : > { %v1186_v1 = vpop.permute.xlu0 %1185 }
 0x7dc   : > { %v1188_v2 = vsel %vm846_vm3, %v1013_v45, %v1186_v1  ;;  %v1733_v1 = vld [vmem:[%s724_s18] ss:$0 sm:$0xff] }
 0x7dd   : > { %v1189_v3 = vpack.c.bf16 %v1188_v2, %v1188_v2 }
 0x7df   : > { %1803 = vmatmul.mubr.msk.bf16.vlgmr.msra.gmra.mxu1 %vm798_vm2, %v1189_v3 }
 0x7e0   : > { %1822 = vmatprep.mubr.msk.bf16.mxu1 %vm1943_vm1, %v1942_v17  ;;  %1815 = vmatpush3.bf16.msra.mxu1 %v1882_v30 }
 0x7e1   : > { %1816 = vmatprep.subr.bf16.mxu1 %v1942_v17 }
 0x7e4   : > { %1817 = vmatpush3.bf16.msra.mxu1 %v1883_v31 }
 0x7e5   : > { %1818 = vmatprep.subr.bf16.mxu1 %v1942_v17 }
 0x7e8   : > { %1819 = vmatpush3.bf16.msra.mxu1 %v1884_v32 }
 0x7e9   : > { %1820 = vmatprep.subr.bf16.mxu1 %v1942_v17 }
 0x7ec   : > { %1821 = vmatpush3.bf16.msra.mxu1 %v1885_v33 }
 0x89f   : > { %v1250_v5 = vpop.f32.mrf.mxu1 }
 0x8a0   : > { %v1251_v6 = vadd.f32 %v1723_v4, %v1250_v5 }
 0x8a1   : > { %v1804_v7 = vpop.f32.mrf.mxu1 }
 0x8a2   : > { %v1256_v8 = vadd.f32 %v1251_v6, %v2156_v19 }
 0x8a3   : > { %v1253_v9 = vpop.f32.mrf.mxu1 }
 0x8a4   : > { %v1259_v10 = vsel %vm798_vm2, %v1256_v8, 0.0 }
 0x8a5   : > { %1260 = vadd.xlane.f32.xlu0 %v1259_v10  ;;  %v1805_v11 = vpop.f32.mrf.mxu1 }
 0x92e   : > { %v1261_v12 = vpop.xlane.xlu0 %1260 }
 0x92f   : > { %v1263_v13 = vmul.f32 0.03125, %v1261_v12 }
 0x931   : > { %v1264_v14 = vsub.f32 %v1256_v8, %v1263_v13 }
 0x933   : > { %v1265_v15 = vmul.f32 %v1264_v14, %v1264_v14 }
 0x935   : > { %v1266_v16 = vsel %vm798_vm2, %v1265_v15, 0.0 }
 0x936   : > { %1267 = vadd.xlane.f32.xlu1 %v1266_v16 }
 0x9bf   : > { %v1268_v19 = vpop.xlane.xlu1 %1267 }
 0x9c0   : > { %v1269_v21 = vmul.f32 0.03125, %v1268_v19 }
 0x9c2   : > { %v1270_v22 = vadd.f32 1e-05, %v1269_v21  ;;  %v1740_v21 = vld [vmem:[%s730_s10] ss:$0 sm:$0xff] }
 0x9c4   : > { %1894 = vrsqrt.f32 %v1270_v22 }
 0x9d1   : > { %v1895_v23 = vpop.eup %1894 }
 0x9d2   : > { %v1272_v25 = vmul.f32 %v1895_v23, %v1264_v14 }
 0x9d4   : > { %v1279_v27 = vmul.f32 %v1727_v24, %v1272_v25 }
 0x9d6   : > { %v1286_v28 = vadd.f32 %v1728_v26, %v1279_v27 }
 0x9d8   : > { %v1287_v29 = vpack.c.bf16 %v1286_v28, %v1286_v28 }
 0x9da   : > { %1811 = vmatmul.mubr.msk.bf16.vlgmr.msra.gmra.mxu0 %vm798_vm2, %v1287_v29 }
 0xa9a   : > { %v1348_v35 = vpop.f32.mrf.mxu0 }
 0xa9b   : > { %v1349_v36 = vadd.f32 %v1729_v34, %v1348_v35 }
 0xa9c   : > { %v1812_v37 = vpop.f32.mrf.mxu0 }
 0xa9d   : > { %v1355_v38 = vmul.f32 0.70710677, %v1349_v36  ;;  %v1354_v61 = vmul.f32 0.5, %v1349_v36 }
 0xa9e   : > { %v1351_v39 = vpop.f32.mrf.mxu0 }
 0xa9f   : > { %v1356_v40 = vand.u32 2147483647, %v1355_v38  ;;  %vm1376_vm5 = vcmp.lt.f32.partialorder %v1355_v38, 0.0 }
 0xaa0   : > { %v1813_v41 = vpop.f32.mrf.mxu0 }
 0xaa1   : > { %v1357_v42 = vmul.f32 0.3275911, %v1356_v40  ;;  %v1370_v44 = vsub.f32 0.0, %v1356_v40 }
 0xaa3   : > { %v1358_v43 = vadd.f32 1.0, %v1357_v42  ;;  %v1371_v45 = vmul.f32 %v1370_v44, %v1356_v40 }
 0xaa5   : > { %1896 = vrcp.f32 %v1358_v43  ;;  %v1372_v47 = vmul.f32 1.442695, %v1371_v45 }
 0xaa7   : > { %1898 = vpow2.f32 %v1372_v47 }
 0xab2   : > { %v1897_v17 = vpop.eup %1896 }
 0xab3   : > { %v1361_v46 = vmul.f32 1.0614054, %v1897_v17 }
 0xab4   : > { %v1899_v56 = vpop.eup %1898 }
 0xab5   : > { %v1362_v48 = vadd.f32 -1.4531521, %v1361_v46 }
 0xab7   : > { %v1363_v49 = vmul.f32 %v1897_v17, %v1362_v48 }
 0xab9   : > { %v1364_v50 = vadd.f32 1.4214138, %v1363_v49 }
 0xabb   : > { %v1365_v51 = vmul.f32 %v1897_v17, %v1364_v50 }
 0xabd   : > { %v1366_v52 = vadd.f32 -0.28449672, %v1365_v51 }
 0xabf   : > { %v1367_v53 = vmul.f32 %v1897_v17, %v1366_v52 }
 0xac1   : > { %v1368_v54 = vadd.f32 0.2548296, %v1367_v53 }
 0xac3   : > { %v1369_v55 = vmul.f32 %v1897_v17, %v1368_v54 }
 0xac5   : > { %v1374_v57 = vmul.f32 %v1899_v56, %v1369_v55 }
 0xac7   : > { %v1375_v58 = vsub.f32 1.0, %v1374_v57 }
 0xac9   : > { %v1377_v59 = vsub.f32 0.0, %v1375_v58 }
 0xacb   : > { %v1378_v60 = vsel %vm1376_vm5, %v1377_v59, %v1375_v58 }
 0xacc   : > { %v1379_v62 = vadd.f32 1.0, %v1378_v60 }
 0xace   : > { %v1380_v63 = vmul.f32 %v1379_v62, %v1354_v61 }
 0xad0   : > { %v1381_v0 = vpack.c.bf16 %v1380_v63, %v1380_v63 }
 0xad2   : > { %1823 = vmatmul.mubr.msk.bf16.vlgmr.msra.gmra.mxu1 %vm1421_vm6, %v1381_v0 }
 0xb92   : > { %v1459_v2 = vpop.f32.mrf.mxu1 }
 0xb93   : > { %v1460_v3 = vadd.f32 %v1733_v1, %v1459_v2 }
 0xb94   : > { %v1824_v4 = vpop.f32.mrf.mxu1 }
 0xb95   : > { %v1465_v5 = vadd.f32 %v1460_v3, %v1286_v28 }
 0xb96   : > { %v1462_v6 = vpop.f32.mrf.mxu1 }
 0xb97   : > { %v1468_v7 = vsel %vm798_vm2, %v1465_v5, 0.0 }
 0xb98   : > { %1469 = vadd.xlane.f32.xlu1 %v1468_v7  ;;  %v1825_v8 = vpop.f32.mrf.mxu1 }
 0xc21   : > { %v1470_v9 = vpop.xlane.xlu1 %1469 }
 0xc22   : > { %v1471_v10 = vmul.f32 0.03125, %v1470_v9 }
 0xc24   : > { %v1472_v11 = vsub.f32 %v1465_v5, %v1471_v10 }
 0xc26   : > { %v1473_v12 = vmul.f32 %v1472_v11, %v1472_v11 }
 0xc28   : > { %v1474_v13 = vsel %vm798_vm2, %v1473_v12, 0.0 }
 0xc29   : > { %1475 = vadd.xlane.f32.xlu1 %v1474_v13 }
 0xcb2   : > { %v1476_v14 = vpop.xlane.xlu1 %1475 }
 0xcb3   : > { %v1477_v15 = vmul.f32 0.03125, %v1476_v14 }
 0xcb5   : > { %v1478_v16 = vadd.f32 1e-05, %v1477_v15 }
 0xcb7   : > { %1900 = vrsqrt.f32 %v1478_v16 }
 0xcc4   : > { %v1901_v18 = vpop.eup %1900 }
 0xcc5   : > { %v1480_v19 = vmul.f32 %v1901_v18, %v1472_v11 }
 0xcc7   : > { %v1487_v22 = vmul.f32 %v1739_v20, %v1480_v19  ;;  %1499 = sbr.rel (%p1741_p8) target bundleno = 3277 (0xccd), region = 92 }
 0xcc9   : > { %v1494_v23 = vadd.f32 %v1740_v21, %v1487_v22 }
 0xccb   : > { %1495 = vst.msk [vmem:[#allocation2] sm:$0xff] %vm798_vm2, %v1494_v23 }
 0xccc   : > { %1500 = vst.msk [vmem:[%s2138_s11] sm:$0xff] %vm798_vm2, %v1494_v23 }
 0xccd PF: > { %s2346_s0 = sld [smem:[#allocation6_spill]] }
 0xcce   : > { %s2347_s21 = sld [smem:[#allocation4_spill]] }
 0xccf   : > { %s2348_s22 = sld [smem:[#allocation5_spill]] }
 0xcd0   : > { %s2349_s23 = sld [smem:[#allocation7_spill]] }
 0xcd1   : > { %s2350_s24 = sld [smem:[#allocation8_spill]] }
 0xcd3   : > { %s26_s25 = sadd.s32 1, %s2346_s0  }
 0xcd4   : > { %p23_p9 = scmp.ge.s32.totalorder %s26_s25, 6  }
 0xcd6   :  { %25 = sbr.rel (!%p23_p9) target bundleno = 11 (0xb), region = 161 }

</bundles_post_ra>
